<compile_context>
chip_gen: v5e
topology: v5e:2x2
jax: 0.10.0
libtpu: 0.0.40
codegen_flags: <defaults>
</compile_context>

<pallas_src>
import jax
import jax.numpy as jnp
from jax.experimental import pallas as pl
from jax.experimental.pallas import tpu as pltpu

LANE = 128


def _round_up(x, m):
    return (x + m - 1) // m * m


def _vmem_limit_bytes():
    """Generation-aware VMEM budget (~60% of physical, known-safe fallback)."""
    limit = 48 * 1024 * 1024          # safe on v5e/v6e (128 MiB) and v7x (64 MiB)
    try:
        cap = int(pltpu.get_tpu_info().vmem_capacity_bytes)
        limit = min(int(cap * 0.6), 100 * 1024 * 1024)
    except Exception:
        pass
    return max(limit, 16 * 1024 * 1024)


def _pick_tile_h(H, W, cin_p, cout_p, vmem_budget):
    """Largest divisor of H whose per-step working set fits the VMEM budget."""
    per_row = (2 * (W + 2) * cin_p * 2     # haloed bf16 input rows, 2 pipeline buffers
               + 2 * W * cout_p * 2        # bf16 output rows, 2 buffers
               + 2 * W * cout_p * 4        # f32 accumulator + temporaries
               + W * cin_p * 2)            # bf16 tap slice temp
    fixed = 2 * 10 * cin_p * cout_p * 2    # resident conv + downsample weights (2 bufs)
    budget = max(vmem_budget - fixed, per_row)
    t = int(max(1, min(H, budget // per_row)))
    # TODO(synk): for prime H this degrades to tile_h == 1 (correct, slow); a
    # padded-H or element-offset fallback would avoid it.
    while H % t:
        t -= 1
    return t


def _pick_row_block(M, C, vmem_budget):
    """Row block for the mem-bound BN+residual+act pass (multiple of 8)."""
    per_row = C * 32                       # bf16/f32 operands, double-buffered (rough)
    target = int(max(8, min(M, vmem_budget // max(per_row, 1))))
    if target >= M:
        return M
    for cand in range(target - target % 8, 7, -8):
        if M % cand == 0:
            return cand
    return M


def _halo_tiles(x_nhwc, tile_h):
    """(N,H,W,C) -> (N, HT, tile_h+2, W+2, C) zero-padded, haloed H-tiles."""
    N, H, W, C = x_nhwc.shape
    HT = H // tile_h
    xp = jnp.pad(x_nhwc, ((0, 0), (1, 1), (1, 1), (0, 0)))
    rows = jnp.arange(HT)[:, None] * tile_h + jnp.arange(tile_h + 2)[None, :]
    return xp[:, rows]


def _act_fn(activation):
    def act(y):
        if activation == "relu":
            return jnp.maximum(y, 0.0)
        if activation == "elu":
            return jnp.where(y > 0.0, y, jnp.exp(y) - 1.0)
        return jnp.where(y > 0.0, y, 0.1 * y)     # leaky_relu, slope 0.1
    return act


# ----------------------------------------------------------------------------
# Conv pass: 3x3 conv (9 accumulating MXU matmuls) + per-tile BN partial stats,
# optional fused 1x1 downsample, optional fused BN+act prologue on the input.
# ----------------------------------------------------------------------------
def _make_conv_kernel(tile_h, W, H, cin_p, cout_p, fuse_ds, prologue_act):
    R = tile_h * W
    act = _act_fn(prologue_act) if prologue_act is not None else None

    def kernel(*refs):
        idx = 0
        xh_ref = refs[idx]; idx += 1
        if prologue_act is not None:
            scale_ref, shift_ref = refs[idx], refs[idx + 1]; idx += 2
        w_ref = refs[idx]; idx += 1
        if fuse_ds:
            wds_ref = refs[idx]; idx += 1
        y_ref, s_ref, q_ref = refs[idx], refs[idx + 1], refs[idx + 2]; idx += 3
        if fuse_ds:
            yds_ref, sds_ref, qds_ref = refs[idx], refs[idx + 1], refs[idx + 2]

        # haloed input tile: (tile_h+2, W+2, cin_p) bf16
        x = xh_ref[0, 0]

        if prologue_act is not None:
            # Fused BN1 + activation on the raw conv1 output tile; the spatial
            # zero-pad border must be re-zeroed because act(shift) != 0.
            xf = x.astype(jnp.float32) * scale_ref[...] + shift_ref[...]
            xf = act(xf)
            t = pl.program_id(1)
            row = jax.lax.broadcasted_iota(jnp.int32, (tile_h + 2, W + 2, 1), 0) \
                + t * tile_h
            col = jax.lax.broadcasted_iota(jnp.int32, (tile_h + 2, W + 2, 1), 1)
            valid = (row >= 1) & (row <= H) & (col >= 1) & (col <= W)
            x = jnp.where(valid, xf, 0.0).astype(jnp.bfloat16)

        # 9 accumulating matmuls (no im2col concat); weight stays resident.
        acc = None
        center = None
        for kh in range(3):
            for kw in range(3):
                tap = x[kh:kh + tile_h, kw:kw + W, :].reshape(R, cin_p)
                if kh == 1 and kw == 1:
                    center = tap
                k = kh * 3 + kw
                wk = w_ref[k * cin_p:(k + 1) * cin_p, :]
                part = jnp.dot(tap, wk, preferred_element_type=jnp.float32)
                acc = part if acc is None else acc + part

        # bf16 activation writeback; f32 partial stats from the f32 accumulator.
        y_ref[0, 0] = acc.astype(y_ref.dtype)
        s_ref[0, 0] = jnp.sum(acc, axis=0, keepdims=True)
        q_ref[0, 0] = jnp.sum(acc * acc, axis=0, keepdims=True)

        if fuse_ds:
            # 1x1 downsample conv reuses the already-formed center tap.
            accd = jnp.dot(center, wds_ref[...], preferred_element_type=jnp.float32)
            yds_ref[0, 0] = accd.astype(yds_ref.dtype)
            sds_ref[0, 0] = jnp.sum(accd, axis=0, keepdims=True)
            qds_ref[0, 0] = jnp.sum(accd * accd, axis=0, keepdims=True)

    return kernel


def conv_pass(xh, w_taps, *, H, W, tile_h, wds=None, prologue=None, vmem_limit):
    """xh: (N, HT, tile_h+2, W+2, cin_p) bf16 haloed tiles.
    w_taps: (9*cin_p, cout_p) bf16.  wds: optional (cin_p, cout_p) bf16.
    prologue: optional (scale, shift, activation) fused onto the input."""
    N, HT, THp, Wp, cin_p = xh.shape
    cout_p = w_taps.shape[-1]
    R = tile_h * W
    fuse_ds = wds is not None

    inputs = [xh]
    in_specs = [pl.BlockSpec((1, 1, THp, Wp, cin_p), lambda n, t: (n, t, 0, 0, 0))]

    prologue_act = None
    if prologue is not None:
        scale, shift, prologue_act = prologue
        inputs += [scale, shift]
        in_specs += [pl.BlockSpec((1, cin_p), lambda n, t: (0, 0)),
                     pl.BlockSpec((1, cin_p), lambda n, t: (0, 0))]

    inputs.append(w_taps)
    in_specs.append(pl.BlockSpec(w_taps.shape, lambda n, t: (0, 0)))  # resident
    if fuse_ds:
        inputs.append(wds)
        in_specs.append(pl.BlockSpec(wds.shape, lambda n, t: (0, 0)))

    kernel = _make_conv_kernel(tile_h, W, H, cin_p, cout_p, fuse_ds, prologue_act)

    # Flattened (R, cout_p) output block: sublane-aligned, lane-dense stores.
    y_spec = pl.BlockSpec((1, 1, R, cout_p), lambda n, t: (n, t, 0, 0))
    st_spec = pl.BlockSpec((1, 1, 1, cout_p), lambda n, t: (n, t, 0, 0))
    y_shape = jax.ShapeDtypeStruct((N, HT, R, cout_p), jnp.bfloat16)
    st_shape = jax.ShapeDtypeStruct((N, HT, 1, cout_p), jnp.float32)

    out_specs = [y_spec, st_spec, st_spec]
    out_shapes = [y_shape, st_shape, st_shape]
    if fuse_ds:
        out_specs += [y_spec, st_spec, st_spec]
        out_shapes += [y_shape, st_shape, st_shape]

    return pl.pallas_call(
        kernel,
        grid=(N, HT),
        in_specs=in_specs,
        out_specs=tuple(out_specs),
        out_shape=tuple(out_shapes),
        compiler_params=pltpu.CompilerParams(
            dimension_semantics=("parallel", "parallel"),
            vmem_limit_bytes=vmem_limit),
    )(*inputs)


# ----------------------------------------------------------------------------
# Final pass: BN2 (folded scale/shift) + residual (identity or downsample-BN)
# + activation, on a flattened (N*H*W, C) layout with large row blocks.
# ----------------------------------------------------------------------------
def _make_bn_res_act_kernel(activation, residual_mode):
    act = _act_fn(activation)

    def kernel(*refs):
        o_ref = refs[-1]
        y = refs[0][...].astype(jnp.float32) * refs[1][...] + refs[2][...]
        if residual_mode == "plain":
            y = y + refs[3][...].astype(jnp.float32)
        elif residual_mode == "bn":
            y = y + refs[3][...].astype(jnp.float32) * refs[4][...] + refs[5][...]
        o_ref[...] = act(y).astype(o_ref.dtype)

    return kernel


def bn_res_act_pass(y, scale, shift, *, activation, out_dtype,
                    residual=None, ds=None, vmem_limit):
    M, C = y.shape
    rb = _pick_row_block(M, C, vmem_limit)
    assert M % rb == 0
    row_spec = pl.BlockSpec((rb, C), lambda i: (i, 0))
    vec_spec = pl.BlockSpec((1, C), lambda i: (0, 0))       # resident constants

    inputs, in_specs = [y, scale, shift], [row_spec, vec_spec, vec_spec]
    if ds is not None:
        mode = "bn"
        yds, sds, bds = ds
        inputs += [yds, sds, bds]
        in_specs += [row_spec, vec_spec, vec_spec]
    elif residual is not None:
        mode = "plain"
        inputs.append(residual)
        in_specs.append(row_spec)
    else:
        mode = "none"

    return pl.pallas_call(
        _make_bn_res_act_kernel(activation, mode),
        grid=(M // rb,),
        in_specs=in_specs,
        out_specs=pl.BlockSpec((rb, C), lambda i: (i, 0)),
        out_shape=jax.ShapeDtypeStruct((M, C), out_dtype),
        compiler_params=pltpu.CompilerParams(
            dimension_semantics=("parallel",),
            vmem_limit_bytes=vmem_limit),
    )(*inputs)


# ----------------------------------------------------------------------------
# BN fold: per-tile partial sums -> (scale, shift) of training-mode BatchNorm.
# ----------------------------------------------------------------------------
def _fold_bn(sum_part, sumsq_part, count, gamma_p, beta_p, eps):
    mean = jnp.sum(sum_part, axis=(0, 1, 2)) / count
    ex2 = jnp.sum(sumsq_part, axis=(0, 1, 2)) / count
    var = jnp.maximum(ex2 - mean * mean, 0.0)          # biased batch variance
    scale = gamma_p * jax.lax.rsqrt(var + eps)
    shift = beta_p - mean * scale
    c = gamma_p.shape[0]
    return scale.reshape(1, c), shift.reshape(1, c)


# ----------------------------------------------------------------------------
# ResNetBlockBatchNorm forward
# ----------------------------------------------------------------------------
def resnet_block_batchnorm(x_nchw, params, *, stride=1, activation="relu",
                           eps=1e-5, tile_h=None):
    # TODO(synk): stride > 1 (strided 3x3 / strided 1x1 downsample) not wired
    # into the haloed-tile extraction; this covers the module's stride=1 path.
    assert stride == 1
    assert activation in ("relu", "elu", "leaky_relu")

    N, Cin, H, W = x_nchw.shape
    Cout = params["w1"].shape[0]
    cin_p, cout_p = _round_up(Cin, LANE), _round_up(Cout, LANE)
    has_ds = "w_ds" in params
    if not has_ds:
        assert Cin == Cout, "identity residual requires inplanes == planes"

    vmem_limit = _vmem_limit_bytes()
    if tile_h is None:
        tile_h = _pick_tile_h(H, W, cin_p, cout_p, vmem_limit)
    assert H % tile_h == 0
    HT = H // tile_h
    M = N * H * W
    count = float(M)

    def pack_w(w, ci_pad, co_pad):          # OIHW -> (K*K*ci_pad, co_pad) bf16
        co, ci, kh, kw = w.shape
        wt = jnp.transpose(w, (2, 3, 1, 0)).astype(jnp.float32)
        wt = jnp.pad(wt, ((0, 0), (0, 0), (0, ci_pad - ci), (0, co_pad - co)))
        return wt.reshape(kh * kw * ci_pad, co_pad).astype(jnp.bfloat16)

    def pad_vec(v, cp):
        return jnp.pad(v.astype(jnp.float32), (0, cp - v.shape[0]))

    # NCHW -> NHWC, pad channels to a 128-lane multiple, bf16 matmul inputs.
    x = jnp.transpose(x_nchw, (0, 2, 3, 1)).astype(jnp.float32)
    x_p = jnp.pad(x, ((0, 0), (0, 0), (0, 0), (0, cin_p - Cin))).astype(jnp.bfloat16)

    # ---- stage 1: conv1 (3x3) [+ fused downsample 1x1] + BN partial stats ----
    w1 = pack_w(params["w1"], cin_p, cout_p)
    wds = pack_w(params["w_ds"], cin_p, cout_p) if has_ds else None
    xh = _halo_tiles(x_p, tile_h)
    outs = conv_pass(xh, w1, H=H, W=W, tile_h=tile_h, wds=wds,
                     vmem_limit=vmem_limit)
    if has_ds:
        y1, s1, q1, yds, sds, qds = outs
    else:
        y1, s1, q1 = outs

    scale1, shift1 = _fold_bn(s1, q1, count, pad_vec(params["g1"], cout_p),
                              pad_vec(params["b1"], cout_p), eps)

    # ---- stage 2: conv2 (3x3) with fused BN1 + activation prologue ----------
    w2 = pack_w(params["w2"], cout_p, cout_p)
    y1h = _halo_tiles(y1.reshape(N, H, W, cout_p), tile_h)   # raw bf16 y1 tiles
    y2, s2, q2 = conv_pass(y1h, w2, H=H, W=W, tile_h=tile_h,
                           prologue=(scale1, shift1, activation),
                           vmem_limit=vmem_limit)
    scale2, shift2 = _fold_bn(s2, q2, count, pad_vec(params["g2"], cout_p),
                              pad_vec(params["b2"], cout_p), eps)

    # ---- BN2 + residual (identity or fused downsample-BN) + activation ------
    y2f = y2.reshape(M, cout_p)
    if has_ds:
        scaled, shiftd = _fold_bn(sds, qds, count,
                                  pad_vec(params["g_ds"], cout_p),
                                  pad_vec(params["b_ds"], cout_p), eps)
        out = bn_res_act_pass(y2f, scale2, shift2, activation=activation,
                              out_dtype=jnp.float32, vmem_limit=vmem_limit,
                              ds=(yds.reshape(M, cout_p), scaled, shiftd))
    else:
        # Residual reuses the bf16 channel-padded input (no extra materialization).
        out = bn_res_act_pass(y2f, scale2, shift2, activation=activation,
                              out_dtype=jnp.float32, vmem_limit=vmem_limit,
                              residual=x_p.reshape(M, cin_p))

    out_nhwc = out.reshape(N, H, W, cout_p)[..., :Cout]
    return jnp.transpose(out_nhwc, (0, 3, 1, 2))  # NHWC -> NCHW


# ----------------------------------------------------------------------------
# Pure-JAX reference (mirrors the PyTorch forward, training-mode BN)
# ----------------------------------------------------------------------------
def resnet_block_reference(x, params, activation="relu", eps=1e-5):
    def conv(x, w, pad):
        return jax.lax.conv_general_dilated(
            x, w, (1, 1), [(pad, pad), (pad, pad)],
            dimension_numbers=("NCHW", "OIHW", "NCHW"))

    def bn(y, g, b):
        mean = jnp.mean(y, axis=(0, 2, 3), keepdims=True)
        var = jnp.mean((y - mean) ** 2, axis=(0, 2, 3), keepdims=True)
        return (y - mean) / jnp.sqrt(var + eps) * g.reshape(1, -1, 1, 1) \
            + b.reshape(1, -1, 1, 1)

    act = _act_fn(activation)
    out = act(bn(conv(x, params["w1"], 1), params["g1"], params["b1"]))
    out = bn(conv(out, params["w2"], 1), params["g2"], params["b2"])
    if "w_ds" in params:
        residual = bn(conv(x, params["w_ds"], 0), params["g_ds"], params["b_ds"])
    else:
        residual = x
    return act(out + residual)


if __name__ == "__main__":
    key = jax.random.PRNGKey(0)
    k1, k2, k3, k4, k5, kx = jax.random.split(key, 6)

    N, H, W = 2, 16, 16
    inplanes, planes = 4, 8
    ones = lambda c: jnp.ones((c,), jnp.float32)
    zeros = lambda c: jnp.zeros((c,), jnp.float32)

    # tolerance: bf16 matmul inputs + bf16 intermediates, f32 accumulation and
    # f32 BN statistics (the bf16 activation storage slightly loosens accuracy).
    ATOL = RTOL = 7.5e-2

    # --- case 1: inplanes != planes -> downsample (1x1 conv + BN) branch -----
    params_ds = {
        "w1": 0.2 * jax.random.normal(k1, (planes, inplanes, 3, 3), jnp.float32),
        "g1": ones(planes), "b1": zeros(planes),
        "w2": 0.2 * jax.random.normal(k2, (planes, planes, 3, 3), jnp.float32),
        "g2": ones(planes), "b2": zeros(planes),
        "w_ds": 0.2 * jax.random.normal(k3, (planes, inplanes, 1, 1), jnp.float32),
        "g_ds": ones(planes), "b_ds": zeros(planes),
    }
    x1 = jax.random.normal(kx, (N, inplanes, H, W), jnp.float32)

    out1 = jax.block_until_ready(
        resnet_block_batchnorm(x1, params_ds, activation="relu", tile_h=4))
    ref1 = resnet_block_reference(x1, params_ds, activation="relu")
    assert out1.shape == (N, planes, H, W), out1.shape
    err1 = float(jnp.max(jnp.abs(out1 - ref1)))
    assert jnp.allclose(out1, ref1, atol=ATOL, rtol=RTOL), f"max_err={err1}"

    # --- case 2: inplanes == planes -> identity residual, leaky_relu,
    #             auto tile_h (derived from the device VMEM budget) ----------
    params_id = {
        "w1": 0.2 * jax.random.normal(k4, (planes, planes, 3, 3), jnp.float32),
        "g1": ones(planes), "b1": zeros(planes),
        "w2": 0.2 * jax.random.normal(k5, (planes, planes, 3, 3), jnp.float32),
        "g2": ones(planes), "b2": zeros(planes),
    }
    x2 = jax.random.normal(jax.random.PRNGKey(1), (N, planes, H, W), jnp.float32)

    out2 = jax.block_until_ready(
        resnet_block_batchnorm(x2, params_id, activation="leaky_relu"))
    ref2 = resnet_block_reference(x2, params_id, activation="leaky_relu")
    assert out2.shape == (N, planes, H, W), out2.shape
    err2 = float(jnp.max(jnp.abs(out2 - ref2)))
    assert jnp.allclose(out2, ref2, atol=ATOL, rtol=RTOL), f"max_err={err2}"

    print("KERNEL_OK")
</pallas_src>

<mosaic_0001>
module attributes {stable_mosaic.version = 11 : i64} {
  func.func @kernel(%arg0: i32, %arg1: i32, %arg2: memref<1x1x6x18x128xbf16, #tpu.memory_space<vmem>>, %arg3: memref<1152x128xbf16, #tpu.memory_space<vmem>>, %arg4: memref<128x128xbf16, #tpu.memory_space<vmem>>, %arg5: memref<1x1x64x128xbf16, #tpu.memory_space<vmem>>, %arg6: memref<1x1x1x128xf32, #tpu.memory_space<vmem>>, %arg7: memref<1x1x1x128xf32, #tpu.memory_space<vmem>>, %arg8: memref<1x1x64x128xbf16, #tpu.memory_space<vmem>>, %arg9: memref<1x1x1x128xf32, #tpu.memory_space<vmem>>, %arg10: memref<1x1x1x128xf32, #tpu.memory_space<vmem>>) attributes {dimension_semantics = [#tpu.dimension_semantics<parallel>, #tpu.dimension_semantics<parallel>], iteration_bounds = array<i64: 2, 4>, scalar_prefetch = 0 : i64, scratch_operands = 0 : i64, tpu.core_type = #tpu.core_type<tc>, window_params = [{transform_indices = @transform_0, window_bounds = array<i64: 1, 1, 6, 18, 128>}, {pipeline_mode = #tpu.pipeline_mode<synchronous>, transform_indices = @transform_1, window_bounds = array<i64: 1152, 128>}, {pipeline_mode = #tpu.pipeline_mode<synchronous>, transform_indices = @transform_2, window_bounds = array<i64: 128, 128>}, {transform_indices = @transform_3, window_bounds = array<i64: 1, 1, 64, 128>}, {transform_indices = @transform_4, window_bounds = array<i64: 1, 1, 1, 128>}, {transform_indices = @transform_5, window_bounds = array<i64: 1, 1, 1, 128>}, {transform_indices = @transform_6, window_bounds = array<i64: 1, 1, 64, 128>}, {transform_indices = @transform_7, window_bounds = array<i64: 1, 1, 1, 128>}, {transform_indices = @transform_8, window_bounds = array<i64: 1, 1, 1, 128>}]} {
    %c0 = arith.constant 0 : index
    %c0_0 = arith.constant 0 : index
    %c0_1 = arith.constant 0 : index
    %c0_2 = arith.constant 0 : index
    %c0_3 = arith.constant 0 : index
    %0 = vector.load %arg2[%c0, %c0_0, %c0_1, %c0_2, %c0_3] : memref<1x1x6x18x128xbf16, #tpu.memory_space<vmem>>, vector<1x1x6x18x128xbf16>
    %1 = vector.shape_cast %0 : vector<1x1x6x18x128xbf16> to vector<6x18x128xbf16>
    %2 = vector.extract_strided_slice %1 {offsets = [0, 0, 0], sizes = [4, 16, 128], strides = [1, 1, 1]} : vector<6x18x128xbf16> to vector<4x16x128xbf16>
    %3 = vector.shape_cast %2 : vector<4x16x128xbf16> to vector<64x128xbf16>
    %c0_4 = arith.constant 0 : index
    %c0_5 = arith.constant 0 : index
    %4 = vector.load %arg3[%c0_4, %c0_5] : memref<1152x128xbf16, #tpu.memory_space<vmem>>, vector<128x128xbf16>
    %cst = arith.constant dense<0.000000e+00> : vector<64x128xf32>
    %5 = tpu.matmul %3, %4, %cst {dimension_numbers = #tpu.dot_dimension_numbers<[1], [0], [0], [1], [0, 0, 1, 1], [], []>} : vector<64x128xbf16>, vector<128x128xbf16>, vector<64x128xf32> -> vector<64x128xf32>
    %6 = vector.extract_strided_slice %1 {offsets = [0, 1, 0], sizes = [4, 16, 128], strides = [1, 1, 1]} : vector<6x18x128xbf16> to vector<4x16x128xbf16>
    %7 = vector.shape_cast %6 : vector<4x16x128xbf16> to vector<64x128xbf16>
    %c128 = arith.constant 128 : index
    %c0_6 = arith.constant 0 : index
    %8 = vector.load %arg3[%c128, %c0_6] : memref<1152x128xbf16, #tpu.memory_space<vmem>>, vector<128x128xbf16>
    %cst_7 = arith.constant dense<0.000000e+00> : vector<64x128xf32>
    %9 = tpu.matmul %7, %8, %cst_7 {dimension_numbers = #tpu.dot_dimension_numbers<[1], [0], [0], [1], [0, 0, 1, 1], [], []>} : vector<64x128xbf16>, vector<128x128xbf16>, vector<64x128xf32> -> vector<64x128xf32>
    %10 = arith.addf %5, %9 : vector<64x128xf32>
    %11 = vector.extract_strided_slice %1 {offsets = [0, 2, 0], sizes = [4, 16, 128], strides = [1, 1, 1]} : vector<6x18x128xbf16> to vector<4x16x128xbf16>
    %12 = vector.shape_cast %11 : vector<4x16x128xbf16> to vector<64x128xbf16>
    %c256 = arith.constant 256 : index
    %c0_8 = arith.constant 0 : index
    %13 = vector.load %arg3[%c256, %c0_8] : memref<1152x128xbf16, #tpu.memory_space<vmem>>, vector<128x128xbf16>
    %cst_9 = arith.constant dense<0.000000e+00> : vector<64x128xf32>
    %14 = tpu.matmul %12, %13, %cst_9 {dimension_numbers = #tpu.dot_dimension_numbers<[1], [0], [0], [1], [0, 0, 1, 1], [], []>} : vector<64x128xbf16>, vector<128x128xbf16>, vector<64x128xf32> -> vector<64x128xf32>
    %15 = arith.addf %10, %14 : vector<64x128xf32>
    %16 = vector.extract_strided_slice %1 {offsets = [1, 0, 0], sizes = [4, 16, 128], strides = [1, 1, 1]} : vector<6x18x128xbf16> to vector<4x16x128xbf16>
    %17 = vector.shape_cast %16 : vector<4x16x128xbf16> to vector<64x128xbf16>
    %c384 = arith.constant 384 : index
    %c0_10 = arith.constant 0 : index
    %18 = vector.load %arg3[%c384, %c0_10] : memref<1152x128xbf16, #tpu.memory_space<vmem>>, vector<128x128xbf16>
    %cst_11 = arith.constant dense<0.000000e+00> : vector<64x128xf32>
    %19 = tpu.matmul %17, %18, %cst_11 {dimension_numbers = #tpu.dot_dimension_numbers<[1], [0], [0], [1], [0, 0, 1, 1], [], []>} : vector<64x128xbf16>, vector<128x128xbf16>, vector<64x128xf32> -> vector<64x128xf32>
    %20 = arith.addf %15, %19 : vector<64x128xf32>
    %21 = vector.extract_strided_slice %1 {offsets = [1, 1, 0], sizes = [4, 16, 128], strides = [1, 1, 1]} : vector<6x18x128xbf16> to vector<4x16x128xbf16>
    %22 = vector.shape_cast %21 : vector<4x16x128xbf16> to vector<64x128xbf16>
    %c512 = arith.constant 512 : index
    %c0_12 = arith.constant 0 : index
    %23 = vector.load %arg3[%c512, %c0_12] : memref<1152x128xbf16, #tpu.memory_space<vmem>>, vector<128x128xbf16>
    %cst_13 = arith.constant dense<0.000000e+00> : vector<64x128xf32>
    %24 = tpu.matmul %22, %23, %cst_13 {dimension_numbers = #tpu.dot_dimension_numbers<[1], [0], [0], [1], [0, 0, 1, 1], [], []>} : vector<64x128xbf16>, vector<128x128xbf16>, vector<64x128xf32> -> vector<64x128xf32>
    %25 = arith.addf %20, %24 : vector<64x128xf32>
    %26 = vector.extract_strided_slice %1 {offsets = [1, 2, 0], sizes = [4, 16, 128], strides = [1, 1, 1]} : vector<6x18x128xbf16> to vector<4x16x128xbf16>
    %27 = vector.shape_cast %26 : vector<4x16x128xbf16> to vector<64x128xbf16>
    %c640 = arith.constant 640 : index
    %c0_14 = arith.constant 0 : index
    %28 = vector.load %arg3[%c640, %c0_14] : memref<1152x128xbf16, #tpu.memory_space<vmem>>, vector<128x128xbf16>
    %cst_15 = arith.constant dense<0.000000e+00> : vector<64x128xf32>
    %29 = tpu.matmul %27, %28, %cst_15 {dimension_numbers = #tpu.dot_dimension_numbers<[1], [0], [0], [1], [0, 0, 1, 1], [], []>} : vector<64x128xbf16>, vector<128x128xbf16>, vector<64x128xf32> -> vector<64x128xf32>
    %30 = arith.addf %25, %29 : vector<64x128xf32>
    %31 = vector.extract_strided_slice %1 {offsets = [2, 0, 0], sizes = [4, 16, 128], strides = [1, 1, 1]} : vector<6x18x128xbf16> to vector<4x16x128xbf16>
    %32 = vector.shape_cast %31 : vector<4x16x128xbf16> to vector<64x128xbf16>
    %c768 = arith.constant 768 : index
    %c0_16 = arith.constant 0 : index
    %33 = vector.load %arg3[%c768, %c0_16] : memref<1152x128xbf16, #tpu.memory_space<vmem>>, vector<128x128xbf16>
    %cst_17 = arith.constant dense<0.000000e+00> : vector<64x128xf32>
    %34 = tpu.matmul %32, %33, %cst_17 {dimension_numbers = #tpu.dot_dimension_numbers<[1], [0], [0], [1], [0, 0, 1, 1], [], []>} : vector<64x128xbf16>, vector<128x128xbf16>, vector<64x128xf32> -> vector<64x128xf32>
    %35 = arith.addf %30, %34 : vector<64x128xf32>
    %36 = vector.extract_strided_slice %1 {offsets = [2, 1, 0], sizes = [4, 16, 128], strides = [1, 1, 1]} : vector<6x18x128xbf16> to vector<4x16x128xbf16>
    %37 = vector.shape_cast %36 : vector<4x16x128xbf16> to vector<64x128xbf16>
    %c896 = arith.constant 896 : index
    %c0_18 = arith.constant 0 : index
    %38 = vector.load %arg3[%c896, %c0_18] : memref<1152x128xbf16, #tpu.memory_space<vmem>>, vector<128x128xbf16>
    %cst_19 = arith.constant dense<0.000000e+00> : vector<64x128xf32>
    %39 = tpu.matmul %37, %38, %cst_19 {dimension_numbers = #tpu.dot_dimension_numbers<[1], [0], [0], [1], [0, 0, 1, 1], [], []>} : vector<64x128xbf16>, vector<128x128xbf16>, vector<64x128xf32> -> vector<64x128xf32>
    %40 = arith.addf %35, %39 : vector<64x128xf32>
    %41 = vector.extract_strided_slice %1 {offsets = [2, 2, 0], sizes = [4, 16, 128], strides = [1, 1, 1]} : vector<6x18x128xbf16> to vector<4x16x128xbf16>
    %42 = vector.shape_cast %41 : vector<4x16x128xbf16> to vector<64x128xbf16>
    %c1024 = arith.constant 1024 : index
    %c0_20 = arith.constant 0 : index
    %43 = vector.load %arg3[%c1024, %c0_20] : memref<1152x128xbf16, #tpu.memory_space<vmem>>, vector<128x128xbf16>
    %cst_21 = arith.constant dense<0.000000e+00> : vector<64x128xf32>
    %44 = tpu.matmul %42, %43, %cst_21 {dimension_numbers = #tpu.dot_dimension_numbers<[1], [0], [0], [1], [0, 0, 1, 1], [], []>} : vector<64x128xbf16>, vector<128x128xbf16>, vector<64x128xf32> -> vector<64x128xf32>
    %45 = arith.addf %40, %44 : vector<64x128xf32>
    %46 = arith.truncf %45 : vector<64x128xf32> to vector<64x128xbf16>
    %c0_22 = arith.constant 0 : index
    %c0_23 = arith.constant 0 : index
    %c0_24 = arith.constant 0 : index
    %c0_25 = arith.constant 0 : index
    %47 = vector.load %arg5[%c0_22, %c0_23, %c0_24, %c0_25] : memref<1x1x64x128xbf16, #tpu.memory_space<vmem>>, vector<1x1x64x128xbf16>
    %48 = vector.shape_cast %47 : vector<1x1x64x128xbf16> to vector<64x128xbf16>
    %49 = vector.shape_cast %46 : vector<64x128xbf16> to vector<1x1x64x128xbf16>
    tpu.vector_store %arg5[%c0_22, %c0_23, %c0_24, %c0_25], %49 {strides = array<i32>} : memref<1x1x64x128xbf16, #tpu.memory_space<vmem>>, vector<1x1x64x128xbf16>,
    %cst_26 = arith.constant dense<0.000000e+00> : vector<128xf32>
    %50 = vector.multi_reduction <add>, %45, %cst_26 [0] : vector<64x128xf32> to vector<128xf32>
    %51 = vector.shape_cast %50 : vector<128xf32> to vector<1x128xf32>
    %c0_27 = arith.constant 0 : index
    %c0_28 = arith.constant 0 : index
    %c0_29 = arith.constant 0 : index
    %c0_30 = arith.constant 0 : index
    %52 = vector.load %arg6[%c0_27, %c0_28, %c0_29, %c0_30] : memref<1x1x1x128xf32, #tpu.memory_space<vmem>>, vector<1x1x1x128xf32>
    %53 = vector.shape_cast %52 : vector<1x1x1x128xf32> to vector<1x128xf32>
    %54 = vector.shape_cast %51 : vector<1x128xf32> to vector<1x1x1x128xf32>
    tpu.vector_store %arg6[%c0_27, %c0_28, %c0_29, %c0_30], %54 {strides = array<i32>} : memref<1x1x1x128xf32, #tpu.memory_space<vmem>>, vector<1x1x1x128xf32>,
    %55 = arith.mulf %45, %45 : vector<64x128xf32>
    %cst_31 = arith.constant dense<0.000000e+00> : vector<128xf32>
    %56 = vector.multi_reduction <add>, %55, %cst_31 [0] : vector<64x128xf32> to vector<128xf32>
    %57 = vector.shape_cast %56 : vector<128xf32> to vector<1x128xf32>
    %c0_32 = arith.constant 0 : index
    %c0_33 = arith.constant 0 : index
    %c0_34 = arith.constant 0 : index
    %c0_35 = arith.constant 0 : index
    %58 = vector.load %arg7[%c0_32, %c0_33, %c0_34, %c0_35] : memref<1x1x1x128xf32, #tpu.memory_space<vmem>>, vector<1x1x1x128xf32>
    %59 = vector.shape_cast %58 : vector<1x1x1x128xf32> to vector<1x128xf32>
    %60 = vector.shape_cast %57 : vector<1x128xf32> to vector<1x1x1x128xf32>
    tpu.vector_store %arg7[%c0_32, %c0_33, %c0_34, %c0_35], %60 {strides = array<i32>} : memref<1x1x1x128xf32, #tpu.memory_space<vmem>>, vector<1x1x1x128xf32>,
    %c0_36 = arith.constant 0 : index
    %c0_37 = arith.constant 0 : index
    %61 = vector.load %arg4[%c0_36, %c0_37] : memref<128x128xbf16, #tpu.memory_space<vmem>>, vector<128x128xbf16>
    %cst_38 = arith.constant dense<0.000000e+00> : vector<64x128xf32>
    %62 = tpu.matmul %22, %61, %cst_38 {dimension_numbers = #tpu.dot_dimension_numbers<[1], [0], [0], [1], [0, 0, 1, 1], [], []>} : vector<64x128xbf16>, vector<128x128xbf16>, vector<64x128xf32> -> vector<64x128xf32>
    %63 = arith.truncf %62 : vector<64x128xf32> to vector<64x128xbf16>
    %c0_39 = arith.constant 0 : index
    %c0_40 = arith.constant 0 : index
    %c0_41 = arith.constant 0 : index
    %c0_42 = arith.constant 0 : index
    %64 = vector.load %arg8[%c0_39, %c0_40, %c0_41, %c0_42] : memref<1x1x64x128xbf16, #tpu.memory_space<vmem>>, vector<1x1x64x128xbf16>
    %65 = vector.shape_cast %64 : vector<1x1x64x128xbf16> to vector<64x128xbf16>
    %66 = vector.shape_cast %63 : vector<64x128xbf16> to vector<1x1x64x128xbf16>
    tpu.vector_store %arg8[%c0_39, %c0_40, %c0_41, %c0_42], %66 {strides = array<i32>} : memref<1x1x64x128xbf16, #tpu.memory_space<vmem>>, vector<1x1x64x128xbf16>,
    %cst_43 = arith.constant dense<0.000000e+00> : vector<128xf32>
    %67 = vector.multi_reduction <add>, %62, %cst_43 [0] : vector<64x128xf32> to vector<128xf32>
    %68 = vector.shape_cast %67 : vector<128xf32> to vector<1x128xf32>
    %c0_44 = arith.constant 0 : index
    %c0_45 = arith.constant 0 : index
    %c0_46 = arith.constant 0 : index
    %c0_47 = arith.constant 0 : index
    %69 = vector.load %arg9[%c0_44, %c0_45, %c0_46, %c0_47] : memref<1x1x1x128xf32, #tpu.memory_space<vmem>>, vector<1x1x1x128xf32>
    %70 = vector.shape_cast %69 : vector<1x1x1x128xf32> to vector<1x128xf32>
    %71 = vector.shape_cast %68 : vector<1x128xf32> to vector<1x1x1x128xf32>
    tpu.vector_store %arg9[%c0_44, %c0_45, %c0_46, %c0_47], %71 {strides = array<i32>} : memref<1x1x1x128xf32, #tpu.memory_space<vmem>>, vector<1x1x1x128xf32>,
    %72 = arith.mulf %62, %62 : vector<64x128xf32>
    %cst_48 = arith.constant dense<0.000000e+00> : vector<128xf32>
    %73 = vector.multi_reduction <add>, %72, %cst_48 [0] : vector<64x128xf32> to vector<128xf32>
    %74 = vector.shape_cast %73 : vector<128xf32> to vector<1x128xf32>
    %c0_49 = arith.constant 0 : index
    %c0_50 = arith.constant 0 : index
    %c0_51 = arith.constant 0 : index
    %c0_52 = arith.constant 0 : index
    %75 = vector.load %arg10[%c0_49, %c0_50, %c0_51, %c0_52] : memref<1x1x1x128xf32, #tpu.memory_space<vmem>>, vector<1x1x1x128xf32>
    %76 = vector.shape_cast %75 : vector<1x1x1x128xf32> to vector<1x128xf32>
    %77 = vector.shape_cast %74 : vector<1x128xf32> to vector<1x1x1x128xf32>
    tpu.vector_store %arg10[%c0_49, %c0_50, %c0_51, %c0_52], %77 {strides = array<i32>} : memref<1x1x1x128xf32, #tpu.memory_space<vmem>>, vector<1x1x1x128xf32>,
    return
  }
  func.func @transform_0(%arg0: i32, %arg1: i32) -> (i32, i32, i32, i32, i32) {
    %c0_i32 = arith.constant 0 : i32
    %c0_i32_0 = arith.constant 0 : i32
    %c0_i32_1 = arith.constant 0 : i32
    %c0_i32_2 = arith.constant 0 : i32
    return %arg0, %arg1, %c0_i32, %c0_i32_0, %c0_i32_1 : i32, i32, i32, i32, i32
  }
  func.func @transform_1(%arg0: i32, %arg1: i32) -> (i32, i32) {
    %c0_i32 = arith.constant 0 : i32
    %c0_i32_0 = arith.constant 0 : i32
    %c0_i32_1 = arith.constant 0 : i32
    return %c0_i32, %c0_i32_0 : i32, i32
  }
  func.func @transform_2(%arg0: i32, %arg1: i32) -> (i32, i32) {
    %c0_i32 = arith.constant 0 : i32
    %c0_i32_0 = arith.constant 0 : i32
    %c0_i32_1 = arith.constant 0 : i32
    return %c0_i32, %c0_i32_0 : i32, i32
  }
  func.func @transform_3(%arg0: i32, %arg1: i32) -> (i32, i32, i32, i32) {
    %c0_i32 = arith.constant 0 : i32
    %c0_i32_0 = arith.constant 0 : i32
    %c0_i32_1 = arith.constant 0 : i32
    return %arg0, %arg1, %c0_i32, %c0_i32_0 : i32, i32, i32, i32
  }
  func.func @transform_4(%arg0: i32, %arg1: i32) -> (i32, i32, i32, i32) {
    %c0_i32 = arith.constant 0 : i32
    %c0_i32_0 = arith.constant 0 : i32
    %c0_i32_1 = arith.constant 0 : i32
    return %arg0, %arg1, %c0_i32, %c0_i32_0 : i32, i32, i32, i32
  }
  func.func @transform_5(%arg0: i32, %arg1: i32) -> (i32, i32, i32, i32) {
    %c0_i32 = arith.constant 0 : i32
    %c0_i32_0 = arith.constant 0 : i32
    %c0_i32_1 = arith.constant 0 : i32
    return %arg0, %arg1, %c0_i32, %c0_i32_0 : i32, i32, i32, i32
  }
  func.func @transform_6(%arg0: i32, %arg1: i32) -> (i32, i32, i32, i32) {
    %c0_i32 = arith.constant 0 : i32
    %c0_i32_0 = arith.constant 0 : i32
    %c0_i32_1 = arith.constant 0 : i32
    return %arg0, %arg1, %c0_i32, %c0_i32_0 : i32, i32, i32, i32
  }
  func.func @transform_7(%arg0: i32, %arg1: i32) -> (i32, i32, i32, i32) {
    %c0_i32 = arith.constant 0 : i32
    %c0_i32_0 = arith.constant 0 : i32
    %c0_i32_1 = arith.constant 0 : i32
    return %arg0, %arg1, %c0_i32, %c0_i32_0 : i32, i32, i32, i32
  }
  func.func @transform_8(%arg0: i32, %arg1: i32) -> (i32, i32, i32, i32) {
    %c0_i32 = arith.constant 0 : i32
    %c0_i32_0 = arith.constant 0 : i32
    %c0_i32_1 = arith.constant 0 : i32
    return %arg0, %arg1, %c0_i32, %c0_i32_0 : i32, i32, i32, i32
  }
}

</mosaic_0001>

<bundles_post_ra>
// kernel: tpu_custom_call.1
= control target key start
LH: loop header
LB: loop body
LE: loop exit
PB: predicated region body
PF: predicated region fallthrough
CT: control target
= control target key end

     0   :  { %s3803_s0 = inlined_call_operand.vmem [shape: bf16[2,4,6,18,128], index: 0, kind: input, shape index: {}]   ;;  %s3804_s1 = inlined_call_operand.vmem [shape: bf16[1152,128], index: 1, kind: input, shape index: {}]   ;;  %s3805_s2 = inlined_call_operand.vmem [shape: bf16[128,128], index: 2, kind: input, shape index: {}]   ;;  %s3806_s3 = inlined_call_operand.hbm [shape: bf16[2,4,64,128], index: 3, kind: output, shape index: {0}]   ;;  %s3807_s4 = inlined_call_operand.hbm [shape: f32[2,4,1,128], index: 4, kind: output, shape index: {1}]   ;;  %s3808_s5 = inlined_call_operand.hbm [shape: f32[2,4,1,128], index: 5, kind: output, shape index: {2}]   ;;  %s3809_s6 = inlined_call_operand.hbm [shape: bf16[2,4,64,128], index: 6, kind: output, shape index: {3}]   ;;  %s3810_s7 = inlined_call_operand.hbm [shape: f32[2,4,1,128], index: 7, kind: output, shape index: {4}]   ;;  %s3811_s8 = inlined_call_operand.hbm [shape: f32[2,4,1,128], index: 8, kind: output, shape index: {5}]  }
   0x1   :  { %3825 = sst [smem:[#allocation22_spill]] %s3803_s0 }
   0x2   :  { %3826 = sst [smem:[#allocation23_spill]] %s3804_s1 }
   0x3   :  { %3827 = sst [smem:[#allocation24_spill]] %s3805_s2 }
   0x4   :  { %14 = vsyncpa [#allocation3], 0 }
   0x5   :  { %16 = vsyncpa [#allocation3 + $0x1], 0 }
   0x6   :  { %17 = vsyncpa [#allocation5], 0 }
   0x7   :  { %19 = vsyncpa [#allocation5 + $0x1], 0 }
   0x8   :  { %20 = vsyncpa [#allocation8], 0 }
   0x9   :  { %22 = vsyncpa [#allocation8 + $0x1], 0 }
   0xa   :  { %23 = vsyncpa [#allocation11], 0 }
   0xb   :  { %25 = vsyncpa [#allocation11 + $0x1], 0  ;;  %s3041_s27 = smov 0   ;;  %s3043_s28 = smov 0  }
   0xc   :  { %s3045_s29 = smov 0   ;;  %s3047_s30 = smov 0  }
   0xd   :  { %s3049_s9 = smov 0   ;;  %s3051_s10 = smov 0  }
   0xe   :  { %s3053_s11 = smov 0   ;;  %s3055_s12 = smov 0  }
   0xf LB: > { %3828 = sst [smem:[#allocation16_spill]] %s2984_s10  ;;  %s3813_s13 = sadd.s32 4294967295, %s2992_s12   ;;  %s2992_s12 = sphi %s3055_s12, %s31_s12   ;;  %s2988_s11 = sphi %s3053_s11, %s3857_s11   ;;  %s2984_s10 = sphi %s3051_s10, %s3856_s10   ;;  %s2980_s9 = sphi %s3049_s9, %s3855_s9   ;;  %s2976_s30 = sphi %s3047_s30, %s3854_s30   ;;  %s2972_s29 = sphi %s3045_s29, %s3860_s29   ;;  %s2968_s28 = sphi %s3043_s28, %s3859_s28   ;;  %s2964_s27 = sphi %s3041_s27, %s3858_s27  }
  0x10   : > { %3829 = sst [smem:[#allocation17_spill]] %s2988_s11  ;;  %s3812_s14 = sadd.s32 4294967294, %s2992_s12  }
  0x11   : > { %s40_s15 = sadd.s32 1, %s2984_s10  ;;  %s43_s16 = sadd.s32 1, %s2988_s11 }
  0x12   : > { %p41_p0 = scmp.ge.s32.totalorder %s40_s15, 4  ;;  %p132_p1 = scmp.ne.s32.totalorder %s2972_s29, %s2968_s28 }
  0x13   : > { %p133_p2 = scmp.eq.s32.totalorder %s3813_s13, 7  ;;  %p138_p5 = scmp.ne.s32.totalorder %s2968_s28, %s2964_s27 }
  0x14   : > { %s3862_s15 = smov (%p41_p0, %s40_s15), 0  ;;  %s3864_s16 = smov (!%p41_p0, %s43_s16), %s2988_s11 }
  0x15   : > { %3830 = sst [smem:[#allocation18_spill]] %s3862_s15  ;;  %s118_s17 = ssub.s32 %s2984_s10, %s3862_s15 }
  0x16   : > { %p3094_p3 = por %p133_p2, %p132_p1  ;;  %p45_p4 = scmp.ge.s32.totalorder %s3864_s16, 2 }
  0x17   : > { %p139_p6 = scmp.eq.s32.totalorder %s3812_s14, 7  ;;  %p2130_p7 = scmp.ge.s32.totalorder %s2992_s12, 1 }
  0x18   : > { %s3866_s16 = smov (%p45_p4, %s3864_s16), 0  ;;  %p315_p9 = scmp.lt.s32.totalorder %s2992_s12, 9 }
  0x19   : > { %3832 = sst [smem:[#allocation19_spill]] %s3866_s16  ;;  %p3105_p8 = por %p139_p6, %p138_p5 }
  0x1a   : > { %s117_s20 = ssub.s32 %s2988_s11, %s3866_s16  ;;  %s122_s21 = sadd.s32 1, %s2972_s29 }
  0x1b   : > { %s119_s22 = sor.u32 %s118_s17, %s117_s20  ;;  %p316_p10 = pnand %p2130_p7, %p315_p9 }
  0x1c   : > { %p120_p11 = scmp.eq.s32.totalorder %s119_s22, 0 }
  0x1d   : > { %319 = sbr.rel (%p316_p10) target bundleno = 432 (0x1b0), region = 32 }
  0x1e   : > { %s3114_s23 = scalar_select %p120_p11, %s2972_s29, %s122_s21  }
  0x22   : > { %s3834_s1 = sld [smem:[#allocation23_spill]]  ;;  %p374_p12 = scmp.lt.s32.totalorder %s2980_s9, 1  ;;  %vm417_vm0 = vsmask.f32 3328  ;;  %vm418_vm1 = vsmask.f32 7440 }
  0x23   : > { %p376_p13 = scmp.lt.s32.totalorder %s2976_s30, 3  ;;  %s3835_s0 = sld [smem:[#allocation22_spill]]  ;;  %vm3194_vm2 = vmor %vm417_vm0, %vm418_vm1  ;;  %vm730_vm3 = vcmask 1042432   ;;  %vm731_vm4 = vcmask 1046532  }
  0x24   : > { %s375_s24 = scalar_select %p374_p12, %s2980_s9, 1  ;;  %vm3354_vm5 = vmor %vm730_vm3, %vm731_vm4 }
  0x25   : > { %s377_s25 = scalar_select %p376_p13, %s2976_s30, 3 }
  0x26   : > { %s2647_s13 = smul.u32 72, %s375_s24  ;;  %s3840_s2 = sld [smem:[#allocation24_spill]] }
  0x27   : > { %s2646_s16 = smul.u32 18, %s377_s25  ;;  %s2486_s26 = sshll.u32 %s2976_s30, 3 }
  0x28   : > { %v2519_v0 = vld [vmem:[%s3834_s1 + $0x78] sm:$0xff]  ;;  %v2518_v2 = vld [vmem:[%s3834_s1 + $0x70] sm:$0xff]  ;;  %v2517_v4 = vld [vmem:[%s3834_s1 + $0x68] sm:$0xff]  ;;  %s3841_s15 = sadd.s32 4294967295, %s2992_s12  }
  0x29   : > { %v2511_v1 = vld [vmem:[%s3834_s1 + $0x38] sm:$0xff]  ;;  %2630 = vmatpush.bf16.msra.mxu2 %v2519_v0  ;;  %v2510_v3 = vld [vmem:[%s3834_s1 + $0x30] sm:$0xff]  ;;  %596 = vmatpush.bf16.msra.mxu0 %v2519_v0  ;;  %v2509_v5 = vld [vmem:[%s3834_s1 + $0x28] sm:$0xff]  ;;  %s380_s17 = sadd.s32 %s2647_s13, %s2646_s16 }
  0x2a   : > { %697 = vmatpush.bf16.msra.mxu1 %v2511_v1  ;;  %2638 = vmatpush.bf16.msra.mxu3 %v2511_v1  ;;  %s2133_s20 = sshll.u32 %s380_s17, 2  ;;  %v2516_v6 = vld [vmem:[%s3834_s1 + $0x60] sm:$0xff]  ;;  %v2515_v22 = vld [vmem:[%s3834_s1 + $0x58] sm:$0xff]  ;;  %v2514_v35 = vld [vmem:[%s3834_s1 + $0x50] sm:$0xff]  ;;  %s2487_s17 = sshll.u32 %s2980_s9, 5 }
  0x2b   : > { %s3144_s10 = scalar_lea.vmem %s3835_s0, %s2133_s20  ;;  %v2508_v7 = vld [vmem:[%s3834_s1 + $0x20] sm:$0xff]  ;;  %v2507_v23 = vld [vmem:[%s3834_s1 + $0x18] sm:$0xff]  ;;  %v2506_v37 = vld [vmem:[%s3834_s1 + $0x10] sm:$0xff]  ;;  %s3589_s20 = sadd.s32 %s2487_s17, %s2486_s26 }
  0x2c   : > { %v3150_v8 = vld [vmem:[%s3144_s10 + $0x18] sm:$0xf]  ;;  %v3153_v9 = vld [vmem:[%s3144_s10 + $0x1c] sm:$0xf]  ;;  %v3156_v10 = vld [vmem:[%s3144_s10 + $0x20] sm:$0x1] }
  0x2d   : > { %2631 = vmatpush.bf16.msra.mxu2 %v2518_v2  ;;  %597 = vmatpush.bf16.msra.mxu0 %v2518_v2  ;;  %v469_v11 = vshrl.u32 %v3150_v8, 16  ;;  %v472_v12 = vshll.u32 %v3150_v8, 16  ;;  %v478_v13 = vshll.u32 %v3153_v9, 16  ;;  %v482_v14 = vshrl.u32 %v3153_v9, 16  ;;  %v3163_v15 = vld [vmem:[%s3144_s10] sm:$0xf] }
  0x2e   : > { %698 = vmatpush.bf16.msra.mxu1 %v2510_v3  ;;  %2639 = vmatpush.bf16.msra.mxu3 %v2510_v3  ;;  %v3166_v16 = vld [vmem:[%s3144_s10 + $0x4] sm:$0xf]  ;;  %v3169_v21 = vld [vmem:[%s3144_s10 + $0x8] sm:$0x1]  ;;  %v488_v24 = vshll.u32 %v3156_v10, 16  ;;  %v421_v25 = vshrl.u32 %v3163_v15, 16 }
  0x2f   : > { %v471_v17 = vrot.slane %v469_v11, 4  ;;  %v474_v18 = vrot.slane %v472_v12, 5  ;;  %v480_v19 = vrot.slane %v478_v13, 5  ;;  %v484_v20 = vrot.slane %v482_v14, 4  ;;  %v3190_v42 = vld [vmem:[%s3144_s10 + $0x24] sm:$0xf] }
  0x30   : > { %v424_v26 = vshll.u32 %v3163_v15, 16  ;;  %v430_v27 = vshll.u32 %v3166_v16, 16  ;;  %v434_v30 = vshrl.u32 %v3166_v16, 16  ;;  %v423_v31 = vrot.slane %v421_v25, 4  ;;  %v3199_v45 = vld [vmem:[%s3144_s10 + $0x28] sm:$0xf] }
  0x31   : > { %2632 = vmatpush.bf16.msra.mxu2 %v2517_v4  ;;  %598 = vmatpush.bf16.msra.mxu0 %v2517_v4  ;;  %v475_v28 = vor.u32 %v474_v18, %v471_v17  ;;  %v485_v29 = vor.u32 %v484_v20, %v480_v19  ;;  %v440_v34 = vshll.u32 %v3169_v21, 16  ;;  %v490_v40 = vrot.slane %v488_v24, 5  ;;  %v3204_v51 = vld [vmem:[%s3144_s10 + $0xc] sm:$0xf]  ;;  %v3219_v58 = vld [vmem:[%s3144_s10 + $0x10] sm:$0xf] }
  0x32   : > { %699 = vmatpush.bf16.msra.mxu1 %v2509_v5  ;;  %2640 = vmatpush.bf16.msra.mxu3 %v2509_v5  ;;  %v426_v32 = vrot.slane %v424_v26, 5  ;;  %v432_v33 = vrot.slane %v430_v27, 5  ;;  %v436_v36 = vrot.slane %v434_v30, 4  ;;  %v493_v49 = vshrl.u32 %v3190_v42, 16  ;;  %v2513_v52 = vld [vmem:[%s3834_s1 + $0x48] sm:$0xff]  ;;  %v2512_v3 = vld [vmem:[%s3834_s1 + $0x40] sm:$0xff] }
  0x33   : > { %v476_v38 = vrot.slane %v475_v28, 4  ;;  %v486_v39 = vrot.slane %v485_v29, 4  ;;  %v442_v47 = vrot.slane %v440_v34, 5  ;;  %v496_v50 = vshll.u32 %v3190_v42, 16  ;;  %v2505_v53 = vld [vmem:[%s3834_s1 + $0x8] sm:$0xff]  ;;  %v2504_v4 = vld [vmem:[%s3834_s1] sm:$0xff] }
  0x34   : > { %v427_v41 = vor.u32 %v426_v32, %v423_v31  ;;  %v437_v44 = vor.u32 %v436_v36, %v432_v33  ;;  %v502_v56 = vshll.u32 %v3199_v45, 16  ;;  %v506_v57 = vshrl.u32 %v3199_v45, 16  ;;  %v3238_v14 = vld [vmem:[%s3144_s10 + $0x2c] sm:$0x1]  ;;  %v2527_v17 = vld [vmem:[%s3834_s1 + $0xb8] sm:$0xff]  ;;  %v2498_v25 = vld [vmem:[%s3144_s10] sm:$0xff] }
  0x35   : > { %2633 = vmatpush.bf16.msra.mxu2 %v2516_v6  ;;  %599 = vmatpush.bf16.msra.mxu0 %v2516_v6  ;;  %v481_v54 = vsel %vm3194_vm2, %v476_v38, %v480_v19  ;;  %v491_v55 = vsel %vm3194_vm2, %v486_v39, %v490_v40  ;;  %v445_v61 = vshrl.u32 %v3204_v51, 16  ;;  %v448_v62 = vshll.u32 %v3204_v51, 16  ;;  %v2535_v18 = vld [vmem:[%s3834_s1 + $0xf8] sm:$0xff]  ;;  %v3250_v26 = vld [vmem:[%s3144_s10 + $0x14] sm:$0x1]  ;;  %s3818_s21 = sshll.u32 %s3589_s20, 2 }
  0x36   : > { %700 = vmatpush.bf16.msra.mxu1 %v2508_v7  ;;  %2641 = vmatpush.bf16.msra.mxu3 %v2508_v7  ;;  %v428_v46 = vrot.slane %v427_v41, 4  ;;  %v438_v48 = vrot.slane %v437_v44, 4  ;;  %v536_v63 = vunpack.c.l.b16 %v481_v54  ;;  %v537_v0 = vunpack.c.l.b16 %v491_v55  ;;  %v3253_v27 = vld [vmem:[%s3144_s10 + $0x18] sm:$0xff]  ;;  %v2526_v34 = vld [vmem:[%s3834_s1 + $0xb0] sm:$0xff]  ;;  %s1857_s25 = scalar_lea.hbm %s3809_s6, %s3818_s21  ;;  %s2489_s17 = sshll.u32 %s2980_s9, 2 }
  0x37   : > { %v454_v1 = vshll.u32 %v3219_v58, 16  ;;  %v458_v2 = vshrl.u32 %v3219_v58, 16  ;;  %v495_v5 = vrot.slane %v493_v49, 4  ;;  %v498_v6 = vrot.slane %v496_v50, 5  ;;  %v2551_v28 = vld [vmem:[%s3834_s1 + $0x178] sm:$0xff]  ;;  %v2534_v38 = vld [vmem:[%s3834_s1 + $0xf0] sm:$0xff] }
  0x38   : > { %v433_v59 = vsel %vm3194_vm2, %v428_v46, %v432_v33  ;;  %v443_v60 = vsel %vm3194_vm2, %v438_v48, %v442_v47  ;;  %v3235_v7 = vrot.slane %v502_v56, 5  ;;  %v508_v11 = vrot.slane %v506_v57, 4  ;;  %v2543_v33 = vld [vmem:[%s3834_s1 + $0x138] sm:$0xff]  ;;  %v2550_v39 = vld [vmem:[%s3834_s1 + $0x170] sm:$0xff]  ;;  %v2525_v47 = vld [vmem:[%s3834_s1 + $0xa8] sm:$0xff]  ;;  %s1860_s26 = sshll.u32 %s1857_s25, 4  ;;  %s1861_s26 = int_to_ptr.hbm [resolvable:$true] %s1860_s26 }
  0x39   : > { %2634 = vmatpush.bf16.msra.mxu2 %v2515_v22  ;;  %600 = vmatpush.bf16.msra.mxu0 %v2515_v22  ;;  %v532_v12 = vunpack.c.l.b16 %v433_v59  ;;  %v533_v13 = vunpack.c.l.b16 %v443_v60  ;;  %v447_v19 = vrot.slane %v445_v61, 4  ;;  %v450_v20 = vrot.slane %v448_v62, 5  ;;  %v2542_v46 = vld [vmem:[%s3834_s1 + $0x130] sm:$0xff]  ;;  %v2541_v56 = vld [vmem:[%s3834_s1 + $0x128] sm:$0xff]  ;;  %v2524_v57 = vld [vmem:[%s3834_s1 + $0xa0] sm:$0xff]  ;;  %s2760_s24 = sshra.s32 %s1861_s26, 4  ;;  %s2761_s24 = int_to_ptr.hbm [resolvable:$true] %s2760_s24 }
  0x3a   : > { %701 = vmatpush.bf16.msra.mxu1 %v2507_v23  ;;  %2642 = vmatpush.bf16.msra.mxu3 %v2507_v23  ;;  %v456_v22 = vrot.slane %v454_v1, 5  ;;  %v460_v23 = vrot.slane %v458_v2, 4  ;;  %v3246_v24 = vpack.c.b16 %v537_v0, %v536_v63  ;;  %v499_v29 = vor.u32 %v498_v6, %v495_v5  ;;  %v2532_v61 = vld [vmem:[%s3834_s1 + $0xe0] sm:$0xff]  ;;  %v3317_v6 = vld [vmem:[%s3144_s10 + $0xc] sm:$0xff]  ;;  %s2762_s25 = scalar_lea.hbm %s2761_s24, 32  ;;  %s2766_s0 = scalar_lea.hbm %s3809_s6, 256 }
  0x3b   : > { %v509_v30 = vor.u32 %v508_v11, %v3235_v7  ;;  %v512_v31 = vshll.u32 %v3238_v14, 16  ;;  %v540_v32 = vpack.c.b16 %v533_v13, %v532_v12  ;;  %v2548_v0 = vld [vmem:[%s3834_s1 + $0x160] sm:$0xff]  ;;  %v2547_v12 = vld [vmem:[%s3834_s1 + $0x158] sm:$0xff]  ;;  %v742_v13 = vrot.slane %v3219_v58, 5  ;;  %p2763_p0 = scmp.ne.s32.totalorder %s2761_s24, %s2762_s25  ;;  %p2767_p4 = scmp.lt.s32.totalorder %s2761_s24, %s3809_s6 }
  0x3c   : > { %v461_v36 = vor.u32 %v460_v23, %v456_v22  ;;  %v500_v40 = vrot.slane %v499_v29, 4  ;;  %v3321_v11 = vld [vmem:[%s3144_s10 + $0x24] sm:$0xff]  ;;  %v2214_v58 = vrot.slane %v3163_v15, 9  ;;  %v738_v23 = vrot.slane %v3169_v21, 5  ;;  %v2530_v15 = vld [vmem:[%s3834_s1 + $0xd0] sm:$0xff]  ;;  %p2768_p5 = scmp.lt.s32.totalorder %s2766_s0, %s2762_s25 }
  0x3d   : > { %2635 = vmatpush.bf16.msra.mxu2 %v2514_v35  ;;  %601 = vmatpush.bf16.msra.mxu0 %v2514_v35  ;;  %v451_v35 = vor.u32 %v450_v20, %v447_v19  ;;  %v510_v41 = vrot.slane %v509_v30, 4  ;;  %v514_v44 = vrot.slane %v512_v31, 5  ;;  %v2522_v19 = vld [vmem:[%s3834_s1 + $0x90] sm:$0xff]  ;;  %v745_v29 = vrot.slane %v3250_v26, 5  ;;  %p2764_p1 = pnand %p2763_p0, %p3094_p3 }
  0x3e   : > { %702 = vmatpush.bf16.msra.mxu1 %v2506_v37  ;;  %2643 = vmatpush.bf16.msra.mxu3 %v2506_v37  ;;  %v464_v37 = vshll.u32 %v3250_v26, 16  ;;  %v462_v49 = vrot.slane %v461_v36, 4  ;;  %v505_v54 = vsel %vm3194_vm2, %v500_v40, %v3235_v7  ;;  %v735_v7 = vrot.slane %v3166_v16, 5  ;;  %v2539_v16 = vld [vmem:[%s3834_s1 + $0x118] sm:$0xff]  ;;  %v2538_v21 = vld [vmem:[%s3834_s1 + $0x110] sm:$0xff]  ;;  %v2545_v26 = vld [vmem:[%s3834_s1 + $0x148] sm:$0xff]  ;;  %p2769_p6 = por %p2768_p5, %p2767_p4 }
  0x3f   : > { %v452_v48 = vrot.slane %v451_v35, 4  ;;  %v515_v55 = vsel %vm3194_vm2, %v510_v41, %v514_v44  ;;  %v538_v62 = vunpack.c.l.b16 %v505_v54  ;;  %v2529_v35 = vld [vmem:[%s3834_s1 + $0xc8] sm:$0xff]  ;;  %v2559_v44 = vld [vmem:[%s3834_s1 + $0x1b8] sm:$0xff]  ;;  %v2558_v54 = vld [vmem:[%s3834_s1 + $0x1b0] sm:$0xff]  ;;  %p2765_p2 = pneg %p2764_p1 }
  0x40   : > { %v466_v50 = vrot.slane %v464_v37, 5  ;;  %v539_v63 = vunpack.c.l.b16 %v515_v55  ;;  %v737_v20 = vrot.slane %v735_v7, 4  ;;  %v736_v31 = vsel %vm3354_vm5, %v2214_v58, %v735_v7  ;;  %v2537_v36 = vld [vmem:[%s3834_s1 + $0x108] sm:$0xff]  ;;  %v2520_v37 = vld [vmem:[%s3834_s1 + $0x80] sm:$0xff] }
  0x41   : > { %2636 = vmatpush.bf16.msra.mxu2 %v2513_v52  ;;  %602 = vmatpush.bf16.msra.mxu0 %v2513_v52  ;;  %v2533_v52 = vld [vmem:[%s3834_s1 + $0xe8] sm:$0xff]  ;;  %v457_v59 = vsel %vm3194_vm2, %v452_v48, %v456_v22  ;;  %v2546_v22 = vld [vmem:[%s3834_s1 + $0x150] sm:$0xff]  ;;  %v2583_v48 = vld [vmem:[%s3840_s2 + $0x38] sm:$0xff]  ;;  %v749_v55 = vrot.slane %v3153_v9, 5  ;;  %v2216_v9 = vrot.slane %v3150_v8, 9  ;;  %p2770_p7 = pnand %p2769_p6, %p2765_p2 }
  0x42   : > { %703 = vmatpush.bf16.msra.mxu1 %v2505_v53  ;;  %2644 = vmatpush.bf16.msra.mxu3 %v2505_v53  ;;  %v2549_v53 = vld [vmem:[%s3834_s1 + $0x168] sm:$0xff]  ;;  %v467_v60 = vsel %vm3194_vm2, %v462_v49, %v466_v50  ;;  %v534_v1 = vunpack.c.l.b16 %v457_v59  ;;  %v3314_v5 = vpack.c.b16 %v539_v63, %v538_v62  ;;  %v2536_v49 = vld [vmem:[%s3834_s1 + $0x100] sm:$0xff]  ;;  %v2567_v50 = vld [vmem:[%s3834_s1 + $0x1f8] sm:$0xff] }
  0x43   : > { %v535_v2 = vunpack.c.l.b16 %v467_v60  ;;  %v2575_v59 = vld [vmem:[%s3834_s1 + $0x238] sm:$0xff]  ;;  %v751_v60 = vrot.slane %v749_v55, 4  ;;  %v2557_v62 = vld [vmem:[%s3834_s1 + $0x1a8] sm:$0xff] }
  0x44   : > { %v2581_v63 = vld [vmem:[%s3840_s2 + $0x28] sm:$0xff] }
  0x45   : > { %2637 = vmatpush.bf16.msra.mxu2 %v2512_v3  ;;  %603 = vmatpush.bf16.msra.mxu0 %v2512_v3  ;;  %v2540_v3 = vld [vmem:[%s3834_s1 + $0x120] sm:$0xff]  ;;  %v2565_v8 = vld [vmem:[%s3834_s1 + $0x1e8] sm:$0xff] }
  0x46   : > { %704 = vmatpush.bf16.msra.mxu1 %v2504_v4  ;;  %2645 = vmatpush.bf16.msra.mxu3 %v2504_v4  ;;  %v2523_v4 = vld [vmem:[%s3834_s1 + $0x98] sm:$0xff] }
  0x48   : > { %614 = vmatmul.bf16.vlgmr.msra.gmra.mxu2 %v3246_v24  ;;  %604 = vmatmul.bf16.vlgmr.msra.gmra.mxu0 %v540_v32  ;;  %v739_v32 = vsel %vm3354_vm5, %v737_v20, %v738_v23  ;;  %v756_v20 = vrot.slane %v3199_v45, 5  ;;  %v2562_v23 = vld [vmem:[%s3834_s1 + $0x1d0] sm:$0xff]  ;;  %v2217_v45 = vrot.slane %v3190_v42, 9  ;;  %v2561_v42 = vld [vmem:[%s3834_s1 + $0x1c8] sm:$0xff] }
  0x49   : > { %841 = vmatpush.bf16.msrb.mxu2 %v2527_v17  ;;  %705 = vmatmul.bf16.vlgmr.msra.gmra.mxu1 %v2498_v25  ;;  %v2531_v17 = vld [vmem:[%s3834_s1 + $0xd8] sm:$0xff]  ;;  %v2215_v25 = vrot.slane %v3204_v51, 9  ;;  %v2521_v51 = vld [vmem:[%s3834_s1 + $0x88] sm:$0xff] }
  0x4a   : > { %948 = vmatpush.bf16.msrb.mxu3 %v2535_v18  ;;  %1190 = vmatpush.bf16.msrb.mxu1 %v2551_v28  ;;  %v3330_v18 = vpack.c.b16 %v535_v2, %v534_v1  ;;  %v744_v28 = vrot.slane %v742_v13, 4  ;;  %v2556_v2 = vld [vmem:[%s3834_s1 + $0x1a0] sm:$0xff] }
  0x4b   : > { %715 = vmatmul.bf16.vlgmr.msra.gmra.mxu3 %v3253_v27  ;;  %1077 = vmatpush.bf16.msrb.mxu0 %v2543_v33  ;;  %v743_v33 = vsel %vm3354_vm5, %v2215_v25, %v742_v13  ;;  %v2555_v13 = vld [vmem:[%s3834_s1 + $0x198] sm:$0xff] }
  0x4c   : > { %v779_v40 = vunpack.c.l.b16 %v743_v33  ;;  %v2571_v25 = vld [vmem:[%s3834_s1 + $0x218] sm:$0xff] }
  0x4d   : > { %842 = vmatpush.bf16.msrb.mxu2 %v2526_v34  ;;  %v746_v34 = vsel %vm3354_vm5, %v744_v28, %v745_v29  ;;  %v758_v28 = vrot.slane %v756_v20, 4  ;;  %v759_v29 = vrot.slane %v3238_v14, 5  ;;  %v2570_v14 = vld [vmem:[%s3834_s1 + $0x210] sm:$0xff] }
  0x4e   : > { %949 = vmatpush.bf16.msrb.mxu3 %v2534_v38  ;;  %1191 = vmatpush.bf16.msrb.mxu1 %v2550_v39  ;;  %v777_v38 = vunpack.c.l.b16 %v736_v31  ;;  %v778_v39 = vunpack.c.l.b16 %v739_v32  ;;  %v780_v41 = vunpack.c.l.b16 %v746_v34  ;;  %v2577_v31 = vld [vmem:[%s3840_s2 + $0x8] sm:$0xff]  ;;  %v757_v32 = vsel %vm3354_vm5, %v2217_v45, %v756_v20  ;;  %v2552_v34 = vld [vmem:[%s3834_s1 + $0x180] sm:$0xff] }
  0x4f   : > { %1078 = vmatpush.bf16.msrb.mxu0 %v2542_v46  ;;  %v2544_v46 = vld [vmem:[%s3834_s1 + $0x140] sm:$0xff]  ;;  %v760_v33 = vsel %vm3354_vm5, %v758_v28, %v759_v29 }
  0x50   : > { %v400_v29 = vld [vmem:[%s3144_s10 + $0x44] sm:$0x1] }
  0x51   : > { %843 = vmatpush.bf16.msrb.mxu2 %v2525_v47  ;;  %v2528_v47 = vld [vmem:[%s3834_s1 + $0xc0] sm:$0xff] }
  0x52   : > { %950 = vmatpush.bf16.msrb.mxu3 %v2533_v52  ;;  %1192 = vmatpush.bf16.msrb.mxu1 %v2549_v53  ;;  %v785_v52 = vpack.c.b16 %v778_v39, %v777_v38  ;;  %v786_v53 = vpack.c.b16 %v780_v41, %v779_v40  ;;  %v2560_v39 = vld [vmem:[%s3834_s1 + $0x1c0] sm:$0xff]  ;;  %v2569_v40 = vld [vmem:[%s3834_s1 + $0x208] sm:$0xff]  ;;  %v783_v41 = vunpack.c.l.b16 %v757_v32 }
  0x53   : > { %1079 = vmatpush.bf16.msrb.mxu0 %v2541_v56  ;;  %v2582_v56 = vld [vmem:[%s3840_s2 + $0x30] sm:$0xff] }
  0x55   : > { %844 = vmatpush.bf16.msrb.mxu2 %v2524_v57  ;;  %v2566_v57 = vld [vmem:[%s3834_s1 + $0x1f0] sm:$0xff] }
  0x56   : > { %951 = vmatpush.bf16.msrb.mxu3 %v2532_v61  ;;  %1193 = vmatpush.bf16.msrb.mxu1 %v2548_v0  ;;  %v752_v61 = vrot.slane %v3156_v10, 5  ;;  %v2574_v10 = vld [vmem:[%s3834_s1 + $0x230] sm:$0xff]  ;;  %v750_v0 = vsel %vm3354_vm5, %v2216_v9, %v749_v55 }
  0x57   : > { %1080 = vmatpush.bf16.msrb.mxu0 %v2540_v3  ;;  %v2580_v3 = vld [vmem:[%s3840_s2 + $0x20] sm:$0xff]  ;;  %v781_v7 = vunpack.c.l.b16 %v750_v0 }
  0x58   : > { %619 = vmatmul.bf16.gmra.mxu2 %v3314_v5  ;;  %609 = vmatmul.bf16.gmra.mxu0 %v3330_v18  ;;  %v753_v1 = vsel %vm3354_vm5, %v751_v60, %v752_v61 }
  0x59   : > { %845 = vmatpush.bf16.msrb.mxu2 %v2523_v4  ;;  %710 = vmatmul.bf16.gmra.mxu1 %v3317_v6  ;;  %v2564_v4 = vld [vmem:[%s3834_s1 + $0x1e0] sm:$0xff] }
  0x5a   : > { %1194 = vmatpush.bf16.msrb.mxu1 %v2547_v12  ;;  %952 = vmatpush.bf16.msrb.mxu3 %v2531_v17  ;;  %v782_v12 = vunpack.c.l.b16 %v753_v1  ;;  %v2579_v17 = vld [vmem:[%s3840_s2 + $0x18] sm:$0xff] }
  0x5b   : > { %720 = vmatmul.bf16.gmra.mxu3 %v3321_v11  ;;  %1081 = vmatpush.bf16.msrb.mxu0 %v2539_v16  ;;  %v2563_v16 = vld [vmem:[%s3834_s1 + $0x1d8] sm:$0xff] }
  0x5c   : > { %v3459_v58 = vpack.c.b16 %v782_v12, %v781_v7 }
  0x5d   : > { %846 = vmatpush.bf16.msrb.mxu2 %v2522_v19  ;;  %v2572_v19 = vld [vmem:[%s3834_s1 + $0x220] sm:$0xff] }
  0x5e   : > { %1195 = vmatpush.bf16.msrb.mxu1 %v2546_v22  ;;  %953 = vmatpush.bf16.msrb.mxu3 %v2530_v15  ;;  %v2554_v22 = vld [vmem:[%s3834_s1 + $0x190] sm:$0xff]  ;;  %v2553_v15 = vld [vmem:[%s3834_s1 + $0x188] sm:$0xff] }
  0x5f   : > { %1082 = vmatpush.bf16.msrb.mxu0 %v2538_v21  ;;  %v2578_v21 = vld [vmem:[%s3840_s2 + $0x10] sm:$0xff] }
  0x61   : > { %847 = vmatpush.bf16.msrb.mxu2 %v2521_v51  ;;  %v395_v51 = vld [vmem:[%s3144_s10 + $0x30] sm:$0xf] }
  0x62   : > { %1196 = vmatpush.bf16.msrb.mxu1 %v2545_v26  ;;  %954 = vmatpush.bf16.msrb.mxu3 %v2529_v35  ;;  %v396_v26 = vld [vmem:[%s3144_s10 + $0x34] sm:$0xf]  ;;  %v986_v35 = vshrl.u32 %v395_v51, 16  ;;  %v2318_v9 = vrot.slane %v395_v51, 9 }
  0x63   : > { %1083 = vmatpush.bf16.msrb.mxu0 %v2537_v36  ;;  %v989_v36 = vshll.u32 %v395_v51, 16  ;;  %v995_v38 = vshll.u32 %v396_v26, 16  ;;  %v1117_v55 = vrot.slane %v396_v26, 5 }
  0x65   : > { %848 = vmatpush.bf16.msrb.mxu2 %v2520_v37  ;;  %v999_v37 = vshrl.u32 %v396_v26, 16  ;;  %v1119_v60 = vrot.slane %v1117_v55, 4 }
  0x66   : > { %1197 = vmatpush.bf16.msrb.mxu1 %v2544_v46  ;;  %955 = vmatpush.bf16.msrb.mxu3 %v2528_v47  ;;  %v2576_v46 = vld [vmem:[%s3840_s2] sm:$0xff]  ;;  %v988_v47 = vrot.slane %v986_v35, 4  ;;  %v1469_v35 = vrot.slane %v400_v29, 5 }
  0x67   : > { %1084 = vmatpush.bf16.msrb.mxu0 %v2536_v49  ;;  %v997_v49 = vrot.slane %v995_v38, 5 }
  0x68   : > { %849 = vmatmul.bf16.vlgmr.msrb.gmra.mxu2 %v785_v52  ;;  %v2568_v52 = vld [vmem:[%s3834_s1 + $0x200] sm:$0xff] }
  0x69   : > { %1297 = vmatpush.bf16.msra.mxu2 %v2559_v44  ;;  %1198 = vmatmul.bf16.vlgmr.msrb.gmra.mxu1 %v786_v53  ;;  %v784_v44 = vunpack.c.l.b16 %v760_v33 }
  0x6a   : > { %1692 = vmatpush.bf16.msra.mxu1 %v2583_v48  ;;  %1426 = vmatpush.bf16.msra.mxu3 %v2567_v50  ;;  %v991_v48 = vrot.slane %v989_v36, 5  ;;  %v1001_v50 = vrot.slane %v999_v37, 4 }
  0x6b   : > { %956 = vmatmul.bf16.vlgmr.msrb.gmra.mxu3 %v3317_v6  ;;  %1085 = vmatmul.bf16.vlgmr.msrb.gmra.mxu0 %v3330_v18  ;;  %v2573_v6 = vld [vmem:[%s3834_s1 + $0x228] sm:$0xff] }
  0x6c   : > { %1539 = vmatpush.bf16.msra.mxu0 %v2575_v59  ;;  %v1002_v59 = vor.u32 %v1001_v50, %v997_v49 }
  0x6d   : > { %1298 = vmatpush.bf16.msra.mxu2 %v2558_v54  ;;  %v397_v54 = vld [vmem:[%s3144_s10 + $0x38] sm:$0x1] }
  0x6e   : > { %1693 = vmatpush.bf16.msra.mxu1 %v2582_v56  ;;  %1427 = vmatpush.bf16.msra.mxu3 %v2566_v57  ;;  %v1005_v56 = vshll.u32 %v397_v54, 16  ;;  %v992_v57 = vor.u32 %v991_v48, %v988_v47  ;;  %v1120_v61 = vrot.slane %v397_v54, 5  ;;  %v2503_v54 = vld [vmem:[%s3144_s10 + $0x3c] sm:$0xff] }
  0x70   : > { %1540 = vmatpush.bf16.msra.mxu0 %v2574_v10  ;;  %v1118_v10 = vsel %vm3354_vm5, %v2318_v9, %v1117_v55  ;;  %v1121_v0 = vsel %vm3354_vm5, %v1119_v60, %v1120_v61 }
  0x71   : > { %1299 = vmatpush.bf16.msra.mxu2 %v2557_v62  ;;  %v993_v62 = vrot.slane %v992_v57, 4 }
  0x72   : > { %1694 = vmatpush.bf16.msra.mxu1 %v2581_v63  ;;  %1428 = vmatpush.bf16.msra.mxu3 %v2565_v8  ;;  %v1003_v63 = vrot.slane %v1002_v59, 4  ;;  %v1007_v8 = vrot.slane %v1005_v56, 5 }
  0x73   : > { %v998_v1 = vsel %vm3194_vm2, %v993_v62, %v997_v49 }
  0x74   : > { %1541 = vmatpush.bf16.msra.mxu0 %v2573_v6  ;;  %v1025_v6 = vunpack.c.l.b16 %v998_v1 }
  0x75   : > { %1300 = vmatpush.bf16.msra.mxu2 %v2556_v2  ;;  %v1008_v2 = vsel %vm3194_vm2, %v1003_v63, %v1007_v8 }
  0x76   : > { %1695 = vmatpush.bf16.msra.mxu1 %v2580_v3  ;;  %1429 = vmatpush.bf16.msra.mxu3 %v2564_v4  ;;  %v1138_v3 = vunpack.c.l.b16 %v1118_v10  ;;  %v1139_v4 = vunpack.c.l.b16 %v1121_v0  ;;  %v1026_v7 = vunpack.c.l.b16 %v1008_v2 }
  0x78   : > { %1542 = vmatpush.bf16.msra.mxu0 %v2572_v19  ;;  %854 = vmatmul.bf16.gmra.mxu2 %v786_v53  ;;  %v788_v53 = vpack.c.b16 %v784_v44, %v783_v41  ;;  %v1140_v12 = vpack.c.b16 %v1139_v4, %v1138_v3  ;;  %v399_v19 = vld [vmem:[%s3144_s10 + $0x40] sm:$0xf] }
  0x79   : > { %1301 = vmatpush.bf16.msra.mxu2 %v2555_v13  ;;  %1203 = vmatmul.bf16.gmra.mxu1 %v3459_v58  ;;  %v2502_v13 = vld [vmem:[%s3144_s10 + $0x30] sm:$0xff] }
  0x7a   : > { %1696 = vmatpush.bf16.msra.mxu1 %v2579_v17  ;;  %1430 = vmatpush.bf16.msra.mxu3 %v2563_v16  ;;  %v3525_v17 = vpack.c.b16 %v1026_v7, %v1025_v6  ;;  %v398_v16 = vld [vmem:[%s3144_s10 + $0x3c] sm:$0xf]  ;;  %s3566_s10 = sand.u32 1, %s2968_s28  }
  0x7b   : > { %961 = vmatmul.bf16.gmra.mxu3 %v3253_v27  ;;  %1090 = vmatmul.bf16.gmra.mxu0 %v3246_v24  ;;  %v1335_v20 = vshrl.u32 %v398_v16, 16  ;;  %v2419_v33 = vrot.slane %v398_v16, 9  ;;  %s2131_s13 = sshll.u32 %s3566_s10, 5 }
  0x7c   : > { %1543 = vmatpush.bf16.msra.mxu0 %v2571_v25  ;;  %s3572_s16 = scalar_lea.vmem [#allocation7], %s2131_s13  ;;  %s3575_s14 = scalar_lea.vmem [#allocation2], %s2131_s13 }
  0x7d   : > { %1302 = vmatpush.bf16.msra.mxu2 %v2554_v22  ;;  %v1338_v22 = vshll.u32 %v398_v16, 16  ;;  %v1337_v25 = vrot.slane %v1335_v20, 4  ;;  %s1858_s11 = sshll.u32 %s3572_s16, 4  ;;  %s3601_s13 = sand.u32 1, %s3841_s15   ;;  %s3603_s11 = int_to_ptr.vmem [resolvable:$true] %s1858_s11 }
  0x7e   : > { %1431 = vmatpush.bf16.msra.mxu3 %v2562_v23  ;;  %1697 = vmatpush.bf16.msra.mxu1 %v2578_v21  ;;  %v1344_v23 = vshll.u32 %v399_v19, 16  ;;  %s3819_s22 = scalar_lea.sflag [#allocation8], %s3601_s13 }
  0x80   : > { %1544 = vmatpush.bf16.msra.mxu0 %v2570_v14  ;;  %v1346_v45 = vrot.slane %v1344_v23, 5 }
  0x81   : > { %1303 = vmatpush.bf16.msra.mxu2 %v2553_v15 }
  0x82   : > { %1432 = vmatpush.bf16.msra.mxu3 %v2561_v42  ;;  %1698 = vmatpush.bf16.msra.mxu1 %v2577_v31 }
  0x84   : > { %1545 = vmatpush.bf16.msra.mxu0 %v2569_v40 }
  0x85   : > { %1304 = vmatpush.bf16.msra.mxu2 %v2552_v34 }
  0x86   : > { %1433 = vmatpush.bf16.msra.mxu3 %v2560_v39  ;;  %1699 = vmatpush.bf16.msra.mxu1 %v2576_v46 }
  0x88   : > { %1546 = vmatpush.bf16.msra.mxu0 %v2568_v52  ;;  %859 = vmatmul.bf16.gmra.mxu2 %v3459_v58 }
  0x89   : > { %1208 = vmatmul.bf16.gmra.mxu1 %v788_v53 }
  0x8b   : > { %966 = vmatmul.bf16.gmra.mxu3 %v3321_v11  ;;  %1095 = vmatmul.bf16.gmra.mxu0 %v3314_v5 }
  0x98   : > { %864 = vmatmul.bf16.gmra.mxu2 %v788_v53 }
  0x99   : > { %1213 = vmatmul.bf16.gmra.mxu1 %v1140_v12 }
  0x9b   : > { %971 = vmatmul.bf16.gmra.mxu3 %v2502_v13  ;;  %1100 = vmatmul.bf16.gmra.mxu0 %v3525_v17 }
  0xa8   : > { %1305 = vmatmul.bf16.vlgmr.msra.gmra.mxu2 %v3253_v27  ;;  %v1348_v27 = vshrl.u32 %v399_v19, 16 }
  0xa9   : > { %1700 = vmatmul.bf16.vlgmr.msra.gmra.mxu1 %v3330_v18  ;;  %v1340_v18 = vrot.slane %v1338_v22, 5 }
  0xaa   : > { %v1350_v28 = vrot.slane %v1348_v27, 4 }
  0xab   : > { %1434 = vmatmul.bf16.vlgmr.msra.gmra.mxu3 %v3246_v24  ;;  %1547 = vmatmul.bf16.vlgmr.msra.gmra.mxu0 %v3459_v58  ;;  %v1341_v58 = vor.u32 %v1340_v18, %v1337_v25 }
  0xac   : > { %v1351_v21 = vor.u32 %v1350_v28, %v1346_v45 }
  0xad   : > { %v1342_v51 = vrot.slane %v1341_v58, 4 }
  0xae   : > { %v1352_v26 = vrot.slane %v1351_v21, 4 }
  0xaf   : > { %v1347_v39 = vsel %vm3194_vm2, %v1342_v51, %v1346_v45 }
  0xb0   : > { %v1374_v47 = vunpack.c.l.b16 %v1347_v39 }
  0xb8   : > { %1310 = vmatmul.bf16.gmra.mxu2 %v3321_v11  ;;  %v1354_v11 = vshll.u32 %v400_v29, 16 }
  0xb9   : > { %1705 = vmatmul.bf16.gmra.mxu1 %v3246_v24  ;;  %v1466_v24 = vrot.slane %v399_v19, 5 }
  0xba   : > { %v1356_v31 = vrot.slane %v1354_v11, 5 }
  0xbb   : > { %1439 = vmatmul.bf16.gmra.mxu3 %v3314_v5  ;;  %1552 = vmatmul.bf16.gmra.mxu0 %v788_v53  ;;  %v1468_v34 = vrot.slane %v1466_v24, 4  ;;  %v1467_v41 = vsel %vm3354_vm5, %v2419_v33, %v1466_v24 }
  0xbc   : > { %v1487_v49 = vunpack.c.l.b16 %v1467_v41 }
  0xbd   : > { %v1470_v44 = vsel %vm3354_vm5, %v1468_v34, %v1469_v35 }
  0xbe   : > { %v1488_v50 = vunpack.c.l.b16 %v1470_v44 }
  0xc0   : > { %v1489_v43 = vpack.c.b16 %v1488_v50, %v1487_v49 }
  0xc5   : > { %v605_v42 = vpop.f32.mrf.mxu0 }
  0xc6   : > { %v706_v15 = vpop.f32.mrf.mxu1 }
  0xc7   : > { %v707_v14 = vadd.f32 %v706_v15, %v605_v42 }
  0xc8   : > { %1315 = vmatmul.bf16.gmra.mxu2 %v2502_v13 }
  0xc9   : > { %1710 = vmatmul.bf16.gmra.mxu1 %v3314_v5  ;;  %v1357_v5 = vsel %vm3194_vm2, %v1352_v26, %v1356_v31 }
  0xca   : > { %v1375_v48 = vunpack.c.l.b16 %v1357_v5 }
  0xcb   : > { %1444 = vmatmul.bf16.gmra.mxu3 %v3525_v17  ;;  %1557 = vmatmul.bf16.gmra.mxu0 %v1140_v12  ;;  %v615_v32 = vpop.f32.mrf.mxu2 }
  0xcc   : > { %v1376_v57 = vpack.c.b16 %v1375_v48, %v1374_v47 }
  0xcd   : > { %v607_v40 = vpop.f32.mrf.mxu0 }
  0xce   : > { %v716_v36 = vpop.f32.mrf.mxu3  ;;  %v708_v38 = vpop.f32.mrf.mxu1 }
  0xcf   : > { %v3540_v37 = vadd.f32 %v716_v36, %v615_v32  ;;  %v709_v46 = vadd.f32 %v708_v38, %v607_v40 }
  0xd3   : > { %v617_v52 = vpop.f32.mrf.mxu2 }
  0xd5   : > { %v610_v59 = vpop.f32.mrf.mxu0 }
  0xd6   : > { %v718_v53 = vpop.f32.mrf.mxu3  ;;  %v711_v56 = vpop.f32.mrf.mxu1 }
  0xd7   : > { %v719_v55 = vadd.f32 %v718_v53, %v617_v52  ;;  %v712_v9 = vadd.f32 %v711_v56, %v610_v59 }
  0xd8   : > { %1320 = vmatmul.bf16.gmra.mxu2 %v2503_v54 }
  0xd9   : > { %1715 = vmatmul.bf16.gmra.mxu1 %v3525_v17 }
  0xdb   : > { %1449 = vmatmul.bf16.gmra.mxu3 %v1376_v57  ;;  %1562 = vmatmul.bf16.gmra.mxu0 %v1489_v43  ;;  %v620_v30 = vpop.f32.mrf.mxu2 }
  0xdd   : > { %v612_v63 = vpop.f32.mrf.mxu0 }
  0xde   : > { %v721_v60 = vpop.f32.mrf.mxu3  ;;  %v713_v62 = vpop.f32.mrf.mxu1 }
  0xdf   : > { %v722_v61 = vadd.f32 %v721_v60, %v620_v30  ;;  %v714_v8 = vadd.f32 %v713_v62, %v612_v63 }
  0xe3   : > { %v622_v10 = vpop.f32.mrf.mxu2 }
  0xe6   : > { %v723_v0 = vpop.f32.mrf.mxu3  ;;  %v1199_v2 = vpop.f32.mrf.mxu1 }
  0xe7   : > { %v724_v1 = vadd.f32 %v723_v0, %v622_v10 }
  0xe8   : > { %v1086_v3 = vpop.f32.mrf.mxu0 }
  0xeb   : > { %v850_v4 = vpop.f32.mrf.mxu2 }
  0xec   : > { %v870_v6 = vadd.f32 %v850_v4, %v707_v14 }
  0xee   : > { %v957_v7 = vpop.f32.mrf.mxu3  ;;  %v1201_v12 = vpop.f32.mrf.mxu1 }
  0xef   : > { %v977_v13 = vadd.f32 %v957_v7, %v870_v6 }
  0xf0   : > { %v1088_v16 = vpop.f32.mrf.mxu0 }
  0xf1   : > { %v1106_v17 = vadd.f32 %v1086_v3, %v977_v13 }
  0xf3   : > { %v1219_v19 = vadd.f32 %v1199_v2, %v1106_v17  ;;  %v852_v20 = vpop.f32.mrf.mxu2 }
  0xf4   : > { %v871_v22 = vadd.f32 %v852_v20, %v709_v46 }
  0xf6   : > { %v959_v23 = vpop.f32.mrf.mxu3  ;;  %v1204_v27 = vpop.f32.mrf.mxu1 }
  0xf7   : > { %v978_v25 = vadd.f32 %v959_v23, %v871_v22 }
  0xf8   : > { %v1091_v18 = vpop.f32.mrf.mxu0 }
  0xf9   : > { %v1107_v45 = vadd.f32 %v1088_v16, %v978_v25 }
  0xfb   : > { %v1220_v28 = vadd.f32 %v1201_v12, %v1107_v45  ;;  %v855_v29 = vpop.f32.mrf.mxu2 }
  0xfc   : > { %v872_v15 = vadd.f32 %v855_v29, %v712_v9 }
  0xfe   : > { %v962_v58 = vpop.f32.mrf.mxu3  ;;  %v1206_v21 = vpop.f32.mrf.mxu1 }
  0xff   : > { %v979_v11 = vadd.f32 %v962_v58, %v872_v15 }
 0x100   : > { %v1093_v42 = vpop.f32.mrf.mxu0 }
 0x101   : > { %v1108_v24 = vadd.f32 %v1091_v18, %v979_v11 }
 0x103   : > { %v3552_v14 = vadd.f32 %v1204_v27, %v1108_v24  ;;  %v857_v51 = vpop.f32.mrf.mxu2 }
 0x104   : > { %v873_v26 = vadd.f32 %v857_v51, %v714_v8 }
 0x106   : > { %v964_v31 = vpop.f32.mrf.mxu3  ;;  %v1209_v32 = vpop.f32.mrf.mxu1 }
 0x107   : > { %v980_v33 = vadd.f32 %v964_v31, %v873_v26 }
 0x108   : > { %v1096_v34 = vpop.f32.mrf.mxu0 }
 0x109   : > { %v1109_v35 = vadd.f32 %v1093_v42, %v980_v33 }
 0x10b   : > { %v3554_v36 = vadd.f32 %v1206_v21, %v1109_v35  ;;  %v860_v38 = vpop.f32.mrf.mxu2 }
 0x10c   : > { %v874_v39 = vadd.f32 %v860_v38, %v3540_v37 }
 0x10e   : > { %v967_v5 = vpop.f32.mrf.mxu3  ;;  %v1211_v40 = vpop.f32.mrf.mxu1 }
 0x10f   : > { %v981_v41 = vadd.f32 %v967_v5, %v874_v39 }
 0x110   : > { %v1098_v44 = vpop.f32.mrf.mxu0 }
 0x111   : > { %v1110_v46 = vadd.f32 %v1096_v34, %v981_v41 }
 0x113   : > { %v3557_v47 = vadd.f32 %v1209_v32, %v1110_v46  ;;  %v862_v48 = vpop.f32.mrf.mxu2 }
 0x114   : > { %v875_v49 = vadd.f32 %v862_v48, %v719_v55 }
 0x116   : > { %v969_v50 = vpop.f32.mrf.mxu3  ;;  %v1214_v52 = vpop.f32.mrf.mxu1 }
 0x117   : > { %v982_v53 = vadd.f32 %v969_v50, %v875_v49 }
 0x118   : > { %v1101_v54 = vpop.f32.mrf.mxu0 }
 0x119   : > { %v1111_v56 = vadd.f32 %v1098_v44, %v982_v53 }
 0x11b   : > { %v3559_v57 = vadd.f32 %v1211_v40, %v1111_v56  ;;  %v865_v43 = vpop.f32.mrf.mxu2 }
 0x11c   : > { %v876_v59 = vadd.f32 %v865_v43, %v722_v61 }
 0x11e   : > { %v972_v37 = vpop.f32.mrf.mxu3  ;;  %v1216_v9 = vpop.f32.mrf.mxu1 }
 0x11f   : > { %v983_v30 = vadd.f32 %v972_v37, %v876_v59 }
 0x120   : > { %v1103_v60 = vpop.f32.mrf.mxu0 }
 0x121   : > { %v1112_v62 = vadd.f32 %v1101_v54, %v983_v30 }
 0x123   : > { %v3561_v63 = vadd.f32 %v1214_v52, %v1112_v62  ;;  %v867_v8 = vpop.f32.mrf.mxu2 }
 0x124   : > { %v877_v10 = vadd.f32 %v867_v8, %v724_v1 }
 0x126   : > { %v974_v55 = vpop.f32.mrf.mxu3  ;;  %v3563_v0 = vpop.f32.mrf.mxu1 }
 0x127   : > { %v984_v2 = vadd.f32 %v974_v55, %v877_v10  ;;  %v1751_v37 = vmul.f32 %v3563_v0, %v3563_v0 }
 0x128   : > { %v1548_v3 = vpop.f32.mrf.mxu0 }
 0x129   : > { %v1113_v4 = vadd.f32 %v1103_v60, %v984_v2 }
 0x12b   : > { %v3569_v61 = vadd.f32 %v1216_v9, %v1113_v4  ;;  %v1306_v6 = vpop.f32.mrf.mxu2 }
 0x12c   : > { %v1326_v13 = vadd.f32 %v1306_v6, %v1219_v19 }
 0x12e   : > { %v1435_v7 = vpop.f32.mrf.mxu3  ;;  %v1703_v12 = vpop.f32.mrf.mxu1 }
 0x12f   : > { %v2607_v16 = vpack.c.bf16 %v1703_v12, %v3563_v0  ;;  %v1455_v1 = vadd.f32 %v1435_v7, %v1326_v13  ;;  %v1752_v9 = vmul.f32 %v1703_v12, %v1703_v12  ;;  %v1737_v62 = vadd.f32 %v1703_v12, %v3563_v0 }
 0x130   : > { %v1550_v17 = vpop.f32.mrf.mxu0 }
 0x131   : > { %2608 = vst [vmem:[%s3572_s16] sm:$0xff] %v2607_v16   ;;  %v1568_v25 = vadd.f32 %v1548_v3, %v1455_v1 }
 0x133   : > { %v1308_v20 = vpop.f32.mrf.mxu2  ;;  %v1606_v15 = vmul.f32 %v1568_v25, %v1568_v25 }
 0x134   : > { %v1327_v22 = vadd.f32 %v1308_v20, %v1220_v28 }
 0x136   : > { %v1437_v23 = vpop.f32.mrf.mxu3  ;;  %v1706_v27 = vpop.f32.mrf.mxu1 }
 0x137   : > { %v1456_v18 = vadd.f32 %v1437_v23, %v1327_v22  ;;  %v1753_v60 = vmul.f32 %v1706_v27, %v1706_v27  ;;  %v1738_v4 = vadd.f32 %v1737_v62, %v1706_v27 }
 0x138   : > { %v1553_v45 = vpop.f32.mrf.mxu0 }
 0x139   : > { %v1569_v29 = vadd.f32 %v1550_v17, %v1456_v18 }
 0x13b   : > { %v2587_v58 = vpack.c.bf16 %v1569_v29, %v1568_v25  ;;  %v1592_v19 = vadd.f32 %v1569_v29, %v1568_v25  ;;  %v1607_v21 = vmul.f32 %v1569_v29, %v1569_v29  ;;  %v1311_v11 = vpop.f32.mrf.mxu2 }
 0x13c   : > { %v1328_v24 = vadd.f32 %v1311_v11, %v3552_v14 }
 0x13d   : > { %2588 = vst [vmem:[%s3575_s14] sm:$0xff] %v2587_v58   ;;  %v1614_v42 = vadd.f32 %v1607_v21, %v1606_v15 }
 0x13e   : > { %v1440_v28 = vpop.f32.mrf.mxu3  ;;  %v1708_v51 = vpop.f32.mrf.mxu1 }
 0x13f   : > { %v1457_v26 = vadd.f32 %v1440_v28, %v1328_v24  ;;  %v2612_v31 = vpack.c.bf16 %v1708_v51, %v1706_v27  ;;  %v1754_v55 = vmul.f32 %v1708_v51, %v1708_v51  ;;  %v1739_v0 = vadd.f32 %v1738_v4, %v1708_v51 }
 0x140   : > { %v1555_v32 = vpop.f32.mrf.mxu0 }
 0x141   : > { %v1570_v33 = vadd.f32 %v1553_v45, %v1457_v26  ;;  %2627 = vst [vmem:[%s3572_s16 + $0x8] sm:$0xff] %v2612_v31  }
 0x143   : > { %v1593_v34 = vadd.f32 %v1592_v19, %v1570_v33  ;;  %v1608_v35 = vmul.f32 %v1570_v33, %v1570_v33  ;;  %v1313_v38 = vpop.f32.mrf.mxu2 }
 0x144   : > { %v1329_v5 = vadd.f32 %v1313_v38, %v3554_v36 }
 0x145   : > { %v1615_v39 = vadd.f32 %v1614_v42, %v1608_v35 }
 0x146   : > { %v1442_v40 = vpop.f32.mrf.mxu3  ;;  %v1711_v41 = vpop.f32.mrf.mxu1 }
 0x147   : > { %v1458_v44 = vadd.f32 %v1442_v40, %v1329_v5  ;;  %v1755_v17 = vmul.f32 %v1711_v41, %v1711_v41  ;;  %v1740_v23 = vadd.f32 %v1739_v0, %v1711_v41 }
 0x148   : > { %v1558_v14 = vpop.f32.mrf.mxu0 }
 0x149   : > { %v1571_v46 = vadd.f32 %v1555_v32, %v1458_v44 }
 0x14b   : > { %v2592_v48 = vpack.c.bf16 %v1571_v46, %v1570_v33  ;;  %v1594_v49 = vadd.f32 %v1593_v34, %v1571_v46  ;;  %v1609_v50 = vmul.f32 %v1571_v46, %v1571_v46  ;;  %v1316_v52 = vpop.f32.mrf.mxu2 }
 0x14c   : > { %v1330_v54 = vadd.f32 %v1316_v52, %v3557_v47  ;;  %v1759_v47 = vadd.f32 %v1752_v9, %v1751_v37 }
 0x14d   : > { %2624 = vst [vmem:[%s3575_s14 + $0x8] sm:$0xff] %v2592_v48   ;;  %v1616_v53 = vadd.f32 %v1615_v39, %v1609_v50 }
 0x14e   : > { %v1445_v56 = vpop.f32.mrf.mxu3  ;;  %v1713_v43 = vpop.f32.mrf.mxu1  ;;  %v1760_v16 = vadd.f32 %v1759_v47, %v1753_v60 }
 0x14f   : > { %v1459_v59 = vadd.f32 %v1445_v56, %v1330_v54  ;;  %v2617_v36 = vpack.c.bf16 %v1713_v43, %v1711_v41  ;;  %v1756_v22 = vmul.f32 %v1713_v43, %v1713_v43  ;;  %v1741_v18 = vadd.f32 %v1740_v23, %v1713_v43 }
 0x150   : > { %v1560_v2 = vpop.f32.mrf.mxu0  ;;  %v1761_v20 = vadd.f32 %v1760_v16, %v1754_v55 }
 0x151   : > { %v1572_v30 = vadd.f32 %v1558_v14, %v1459_v59  ;;  %2628 = vst [vmem:[%s3572_s16 + $0x10] sm:$0xff] %v2617_v36  }
 0x153   : > { %v1595_v8 = vadd.f32 %v1594_v49, %v1572_v30  ;;  %v1610_v10 = vmul.f32 %v1572_v30, %v1572_v30  ;;  %v1318_v3 = vpop.f32.mrf.mxu2 }
 0x154   : > { %v1331_v7 = vadd.f32 %v1318_v3, %v3559_v57  ;;  %v1762_v57 = vadd.f32 %v1761_v20, %v1755_v17 }
 0x155   : > { %v1617_v6 = vadd.f32 %v1616_v53, %v1610_v10 }
 0x156   : > { %v1447_v13 = vpop.f32.mrf.mxu3  ;;  %v1716_v1 = vpop.f32.mrf.mxu1  ;;  %v1763_v58 = vadd.f32 %v1762_v57, %v1756_v22 }
 0x157   : > { %v1460_v12 = vadd.f32 %v1447_v13, %v1331_v7  ;;  %v1757_v27 = vmul.f32 %v1716_v1, %v1716_v1  ;;  %v1742_v11 = vadd.f32 %v1741_v18, %v1716_v1 }
 0x158   : > { %v1563_v51 = vpop.f32.mrf.mxu0 }
 0x159   : > { %v1573_v25 = vadd.f32 %v1560_v2, %v1460_v12  ;;  %v1764_v28 = vadd.f32 %v1763_v58, %v1757_v27 }
 0x15b   : > { %v2597_v45 = vpack.c.bf16 %v1573_v25, %v1572_v30  ;;  %v1596_v29 = vadd.f32 %v1595_v8, %v1573_v25  ;;  %v1611_v15 = vmul.f32 %v1573_v25, %v1573_v25  ;;  %v1321_v19 = vpop.f32.mrf.mxu2 }
 0x15c   : > { %v1332_v42 = vadd.f32 %v1321_v19, %v3561_v63 }
 0x15d   : > { %2625 = vst [vmem:[%s3575_s14 + $0x10] sm:$0xff] %v2597_v45   ;;  %v1618_v21 = vadd.f32 %v1617_v6, %v1611_v15 }
 0x15e   : > { %v1450_v24 = vpop.f32.mrf.mxu3  ;;  %v1718_v26 = vpop.f32.mrf.mxu1 }
 0x15f   : > { %v1461_v31 = vadd.f32 %v1450_v24, %v1332_v42  ;;  %v2622_v32 = vpack.c.bf16 %v1718_v26, %v1716_v1  ;;  %v1743_v33 = vadd.f32 %v1742_v11, %v1718_v26  ;;  %v1758_v34 = vmul.f32 %v1718_v26, %v1718_v26 }
 0x161   : > { %v1574_v35 = vadd.f32 %v1563_v51, %v1461_v31  ;;  %2629 = vst [vmem:[%s3572_s16 + $0x18] sm:$0xff] %v2622_v32   ;;  %v1744_v38 = vrot.slane %v1743_v33, 4  ;;  %v1765_v39 = vadd.f32 %v1764_v28, %v1758_v34 }
 0x162   : > { %2773 = shalt.err (!%p2770_p7)
}
 0x163   : > { %s3820_s9 = smov 64   ;;  %s2995_s16 = smov 4   ;;  %v1597_v63 = vadd.f32 %v1596_v29, %v1574_v35  ;;  %v1612_v5 = vmul.f32 %v1574_v35, %v1574_v35  ;;  %v1745_v40 = vadd.f32 %v1744_v38, %v1743_v33  ;;  %v1766_v41 = vrot.slane %v1765_v39, 4  ;;  %v1323_v44 = vpop.f32.mrf.mxu2 }
 0x164   : > { %2651 = dma.vmem_to_hbm [thread:$0]  (%p3094_p3), %s3603_s11, 512, %s1861_s26, %s3819_s22, %s3820_s9, %s3820_s9, %s2995_s16   ;;  %v1333_v49 = vadd.f32 %v1323_v44, %v3569_v61  ;;  %v1565_v61 = vpop.f32.mrf.mxu0 }
 0x165   : > { %s3627_s0 = sadd.s32 %s2976_s30, %s2489_s17  ;;  %v1619_v46 = vadd.f32 %v1618_v21, %v1612_v5  ;;  %v1746_v14 = vrot.slane %v1745_v40, 2  ;;  %v1767_v48 = vadd.f32 %v1766_v41, %v1765_v39  ;;  %s3842_s1 = sshll.u32 %s3589_s20, 2 }
 0x166   : > { %s1808_s11 = scalar_lea.hbm %s3806_s3, %s3842_s1  ;;  %v1452_v50 = vpop.f32.mrf.mxu3  ;;  %s1809_s26 = sshll.u32 %s3575_s14, 4  ;;  %s3649_s26 = int_to_ptr.vmem [resolvable:$true] %s1809_s26 }
 0x167   : > { %s1874_s24 = scalar_lea.hbm %s3810_s7, %s3627_s0  ;;  %v1747_v52 = vadd.f32 %v1746_v14, %v1745_v40  ;;  %v1768_v53 = vrot.slane %v1767_v48, 2  ;;  %v1462_v54 = vadd.f32 %v1452_v50, %v1333_v49  ;;  %s1889_s22 = scalar_lea.hbm %s3811_s8, %s3627_s0 }
 0x168   : > { %s1811_s20 = sshll.u32 %s1808_s11, 4  ;;  %s3823_s9 = scalar_lea.vmem [#allocation9], %s3566_s10  ;;  %s1812_s20 = int_to_ptr.hbm [resolvable:$true] %s1811_s20 }
 0x169   : > { %s3647_s1 = sshll.u32 %s3823_s9, 4  ;;  %v1748_v56 = vrot.slane %v1747_v52, 1  ;;  %v1575_v43 = vadd.f32 %v1565_v61, %v1462_v54  ;;  %s3651_s2 = sshll.u32 %s1874_s24, 4  ;;  %v1769_v59 = vadd.f32 %v1768_v53, %v1767_v48  ;;  %s1879_s2 = int_to_ptr.hbm [resolvable:$true] %s3651_s2 }
 0x16a   : > { %3843 = sst [smem:[#allocation20_spill]] %s3647_s1  ;;  %s3821_s21 = scalar_lea.vmem [#allocation10], %s3566_s10 }
 0x16b   : > { %s3656_s30 = sshll.u32 %s3821_s21, 4  ;;  %s3658_s11 = sshll.u32 %s1889_s22, 4  ;;  %v2602_v36 = vpack.c.bf16 %v1575_v43, %v1574_v35  ;;  %v1598_v37 = vadd.f32 %v1597_v63, %v1575_v43  ;;  %v1613_v9 = vmul.f32 %v1575_v43, %v1575_v43  ;;  %v1749_v30 = vadd.f32 %v1748_v56, %v1747_v52  ;;  %s1894_s11 = int_to_ptr.hbm [resolvable:$true] %s3658_s11 }
 0x16c   : > { %3844 = sst [smem:[#allocation21_spill]] %s3656_s30  ;;  %v1770_v60 = vrot.slane %v1769_v59, 1  ;;  %s1774_s17 = scalar_lea.sflag [#allocation3], %s3566_s10 }
 0x16d   : > { %2626 = vst [vmem:[%s3575_s14 + $0x18] sm:$0xff] %v2602_v36   ;;  %v1599_v62 = vrot.slane %v1598_v37, 4  ;;  %v1620_v8 = vadd.f32 %v1619_v46, %v1613_v9  ;;  %s2788_s24 = sshra.s32 %s1812_s20, 4  ;;  %s2794_s21 = scalar_lea.hbm %s3806_s3, 256  ;;  %s2789_s24 = int_to_ptr.hbm [resolvable:$true] %s2788_s24 }
 0x16e   : > { %s2790_s22 = scalar_lea.hbm %s2789_s24, 32  ;;  %p2795_p12 = scmp.lt.s32.totalorder %s2789_s24, %s3806_s3 }
 0x16f   : > { %p2791_p9 = scmp.ne.s32.totalorder %s2789_s24, %s2790_s22  ;;  %p2796_p13 = scmp.lt.s32.totalorder %s2794_s21, %s2790_s22 }
 0x171   : > { %p2792_p10 = pnand %p2791_p9, %p3094_p3  ;;  %p2797_p0 = por %p2796_p13, %p2795_p12 }
 0x173   : > { %p2793_p11 = pneg %p2792_p10 }
 0x175   : > { %p2798_p1 = pnand %p2797_p0, %p2793_p11 }
 0x177   : > { %2801 = shalt.err (!%p2798_p1)
}
 0x178   : > { %s3845_s14 = smov 64   ;;  %v1771_v10 = vadd.f32 %v1770_v60, %v1769_v59  ;;  %v1600_v47 = vadd.f32 %v1599_v62, %v1598_v37  ;;  %v1621_v55 = vrot.slane %v1620_v8, 4  ;;  %s1825_s21 = scalar_lea.hbm %s3807_s4, %s3627_s0 }
 0x179   : > { %2648 = dma.vmem_to_hbm [thread:$0]  (%p3094_p3), %s3649_s26, 512, %s1812_s20, %s1774_s17, %s3845_s14, %s3845_s14, %s2995_s16  }
 0x17a   : > { %s3846_s24 = scalar_lea.vmem [#allocation9], %s3566_s10  ;;  %s2816_s22 = sshra.s32 %s1879_s2, 4  ;;  %s2817_s22 = int_to_ptr.hbm [resolvable:$true] %s2816_s22 }
 0x17b   : > { %1750 = vst [vmem:[%s3846_s24] sm:$0x1] %v1749_v30  ;;  %s2818_s25 = scalar_lea.hbm %s2817_s22, 1  ;;  %s2822_s16 = scalar_lea.hbm %s3810_s7, 8 }
 0x17c   : > { %p2819_p2 = scmp.ne.s32.totalorder %s2817_s22, %s2818_s25  ;;  %p2823_p6 = scmp.lt.s32.totalorder %s2817_s22, %s3810_s7 }
 0x17d   : > { %p2824_p7 = scmp.lt.s32.totalorder %s2822_s16, %s2818_s25 }
 0x17e   : > { %p2820_p4 = pnand %p2819_p2, %p3094_p3 }
 0x17f   : > { %p2825_p9 = por %p2824_p7, %p2823_p6 }
 0x180   : > { %p2821_p5 = pneg %p2820_p4 }
 0x182   : > { %p2826_p10 = pnand %p2825_p9, %p2821_p5 }
 0x184   : > { %2829 = shalt.err (!%p2826_p10)
}
 0x185   : > { %s3847_s17 = scalar_lea.sflag [#allocation8], %s3601_s13  ;;  %s3848_s14 = sld [smem:[#allocation20_spill]]  ;;  %v1622_v2 = vadd.f32 %v1621_v55, %v1620_v8  ;;  %v1601_v3 = vrot.slane %v1600_v47, 2 }
 0x186   : > { %s3850_s30 = scalar_lea.vmem [#allocation10], %s3566_s10  ;;  %s1796_s1 = scalar_lea.sflag [#allocation11], %s3566_s10 }
 0x187   : > { %1772 = vst [vmem:[%s3850_s30] sm:$0x1] %v1771_v10  ;;  %s2844_s24 = sshra.s32 %s1894_s11, 4  ;;  %s2850_s16 = scalar_lea.hbm %s3811_s8, 8  ;;  %s2845_s24 = int_to_ptr.hbm [resolvable:$true] %s2844_s24 }
 0x188   : > { %s2846_s22 = scalar_lea.hbm %s2845_s24, 1  ;;  %p2851_p0 = scmp.lt.s32.totalorder %s2845_s24, %s3811_s8 }
 0x189   : > { %p2847_p11 = scmp.ne.s32.totalorder %s2845_s24, %s2846_s22  ;;  %p2852_p1 = scmp.lt.s32.totalorder %s2850_s16, %s2846_s22 }
 0x18b   : > { %s3849_s9 = int_to_ptr.vmem [resolvable:$true] %s3848_s14  ;;  %p2848_p12 = pnand %p2847_p11, %p3094_p3 }
 0x18c   : > { %2652 = dma.vmem_to_hbm [thread:$0]  (%p3094_p3), %s3849_s9, 16, %s1879_s2, %s3847_s17  }
 0x18d   : > { %p2849_p13 = pneg %p2848_p12  ;;  %p2853_p2 = por %p2852_p1, %p2851_p0 }
 0x18f   : > { %p2854_p4 = pnand %p2853_p2, %p2849_p13 }
 0x191   : > { %2857 = shalt.err (!%p2854_p4)
}
 0x192   : > { %s3851_s2 = sld [smem:[#allocation21_spill]]  ;;  %v1602_v4 = vadd.f32 %v1601_v3, %v1600_v47  ;;  %v1623_v6 = vrot.slane %v1622_v2, 2  ;;  %s1840_s30 = scalar_lea.hbm %s3808_s5, %s3627_s0 }
 0x193   : > { %s348_s24 = scalar_lea.vmem [#allocation4], %s3566_s10  ;;  %s3735_s16 = sshll.u32 %s1825_s21, 4  ;;  %s1830_s16 = int_to_ptr.hbm [resolvable:$true] %s3735_s16 }
 0x194   : > { %s3728_s22 = sshll.u32 %s348_s24, 4  ;;  %v1603_v7 = vrot.slane %v1602_v4, 1  ;;  %v1624_v13 = vadd.f32 %v1623_v6, %v1622_v2  ;;  %s3740_s26 = sshll.u32 %s1840_s30, 4  ;;  %s1828_s22 = int_to_ptr.vmem [resolvable:$true] %s3728_s22  ;;  %s1845_s26 = int_to_ptr.hbm [resolvable:$true] %s3740_s26 }
 0x195   : > { %s1779_s0 = scalar_lea.sflag [#allocation5], %s3601_s13  ;;  %s2872_s21 = sshra.s32 %s1830_s16, 4  ;;  %s2873_s21 = int_to_ptr.hbm [resolvable:$true] %s2872_s21 }
 0x196   : > { %v1604_v16 = vadd.f32 %v1603_v7, %v1602_v4  ;;  %v1625_v17 = vrot.slane %v1624_v13, 1  ;;  %s2874_s20 = scalar_lea.hbm %s2873_s21, 1  ;;  %p2879_p9 = scmp.lt.s32.totalorder %s2873_s21, %s3807_s4 }
 0x197   : > { %p2875_p5 = scmp.ne.s32.totalorder %s2873_s21, %s2874_s20 }
 0x198   : > { %s3852_s17 = int_to_ptr.vmem [resolvable:$true] %s3851_s2  ;;  %1605 = vst [vmem:[%s348_s24] sm:$0x1] %v1604_v16  ;;  %v1626_v1 = vadd.f32 %v1625_v17, %v1624_v13 }
 0x199   : > { %2653 = dma.vmem_to_hbm [thread:$0]  (%p3094_p3), %s3852_s17, 16, %s1894_s11, %s1796_s1  }
 0x19a   : > { %s354_s11 = scalar_lea.vmem [#allocation6], %s3566_s10  ;;  %p2876_p6 = pnand %p2875_p5, %p3094_p3 }
 0x19b   : > { %s3738_s1 = sshll.u32 %s354_s11, 4  ;;  %s2878_s17 = scalar_lea.hbm %s3807_s4, 8  ;;  %s1843_s1 = int_to_ptr.vmem [resolvable:$true] %s3738_s1 }
 0x19c   : > { %p2877_p7 = pneg %p2876_p6  ;;  %p2880_p10 = scmp.lt.s32.totalorder %s2878_s17, %s2874_s20 }
 0x19e   : > { %p2881_p11 = por %p2880_p10, %p2879_p9 }
 0x1a0   : > { %p2882_p12 = pnand %p2881_p11, %p2877_p7 }
 0x1a2   : > { %2885 = shalt.err (!%p2882_p12)
}
 0x1a3   : > { %2649 = dma.vmem_to_hbm [thread:$0]  (%p3094_p3), %s1828_s22, 16, %s1830_s16, %s1779_s0   ;;  %1627 = vst [vmem:[%s354_s11] sm:$0x1] %v1626_v1 }
 0x1a4   : > { %s2900_s13 = sshra.s32 %s1845_s26, 4  ;;  %s2906_s15 = scalar_lea.hbm %s3808_s5, 8  ;;  %s2901_s13 = int_to_ptr.hbm [resolvable:$true] %s2900_s13 }
 0x1a5   : > { %s2902_s30 = scalar_lea.hbm %s2901_s13, 1  ;;  %p2907_p2 = scmp.lt.s32.totalorder %s2901_s13, %s3808_s5 }
 0x1a6   : > { %p2903_p13 = scmp.ne.s32.totalorder %s2901_s13, %s2902_s30  ;;  %p2908_p4 = scmp.lt.s32.totalorder %s2906_s15, %s2902_s30 }
 0x1a8   : > { %p2904_p0 = pnand %p2903_p13, %p3094_p3  ;;  %p2909_p5 = por %p2908_p4, %p2907_p2 }
 0x1aa   : > { %p2905_p1 = pneg %p2904_p0 }
 0x1ac   : > { %p2910_p6 = pnand %p2909_p5, %p2905_p1 }
 0x1ae   : > { %2913 = shalt.err (!%p2910_p6)
}
 0x1af   : > { %2650 = dma.vmem_to_hbm [thread:$0]  (%p3094_p3), %s1843_s1, 16, %s1845_s26, %s1779_s0  }
 0x1b0 PF: > { %p2679_p7 = scmp.ge.s32.totalorder %s2992_s12, 2  ;;  %s1905_s22 = sand.u32 1, %s2964_s27  }
 0x1b1   : > { %s1906_s16 = scalar_lea.sflag [#allocation3], %s1905_s22 }
 0x1b2   : > { %p2661_p9 = pnand %p2679_p7, %p3105_p8 }
 0x1b4   : > { %p2662_p10 = pneg %p2661_p9 }
 0x1b6   : > { %2947 = dma.done.wait (%p2662_p10), %s1906_s16, 512  }
 0x1b7   : > { %2949 = vsyncadd (%p2662_p10), %s1906_s16, 4294966784  ;;  %s3853_s11 = sadd.s32 4294967294, %s2992_s12  }
 0x1b8   : > { %s1915_s18 = sand.u32 1, %s3853_s11  }
 0x1b9   : > { %s1916_s10 = scalar_lea.sflag [#allocation5], %s1915_s18 }
 0x1ba   : > { %2951 = dma.done.wait (%p2662_p10), %s1916_s10, 32  }
 0x1bb   : > { %2953 = vsyncadd (%p2662_p10), %s1916_s10, 4294967264  ;;  %s1934_s2 = scalar_lea.sflag [#allocation8], %s1915_s18 }
 0x1bc   : > { %2955 = dma.done.wait (%p2662_p10), %s1934_s2, 528  }
 0x1bd   : > { %2957 = vsyncadd (%p2662_p10), %s1934_s2, 4294966768  ;;  %s1953_s1 = scalar_lea.sflag [#allocation11], %s1905_s22 }
 0x1be   : > { %2959 = dma.done.wait (%p2662_p10), %s1953_s1, 16  }
 0x1bf   : > { %2961 = vsyncadd (%p2662_p10), %s1953_s1, 4294967280  ;;  %s31_s12 = sadd.s32 1, %s2992_s12   ;;  %s3854_s30 = sld [smem:[#allocation16_spill]] }
 0x1c0   : > { %p28_p3 = scmp.ge.s32.totalorder %s31_s12, 10   ;;  %s3855_s9 = sld [smem:[#allocation17_spill]] }
 0x1c1   : > { %s3856_s10 = sld [smem:[#allocation18_spill]]  ;;  %s3858_s27 = smov %s2968_s28 }
 0x1c2   : > { %s3857_s11 = sld [smem:[#allocation19_spill]]  ;;  %s3859_s28 = smov %s2972_s29 }
 0x1c3   : > { %s3860_s29 = smov %s3114_s23  ;;  %30 = sbr.rel (!%p28_p3) target bundleno = 15 (0xf), region = 148 }
 0x1c8   :  { %1958 = vsyncpa [#allocation3], 1 }
 0x1c9   :  { %1960 = vsyncpa [#allocation3 + $0x1], 1 }
 0x1ca   :  { %1961 = vsyncpa [#allocation5], 1 }
 0x1cb   :  { %1963 = vsyncpa [#allocation5 + $0x1], 1 }
 0x1cc   :  { %1964 = vsyncpa [#allocation8], 1 }
 0x1cd   :  { %1966 = vsyncpa [#allocation8 + $0x1], 1 }
 0x1ce   :  { %1967 = vsyncpa [#allocation11], 1 }
 0x1cf   :  { %1969 = vsyncpa [#allocation11 + $0x1], 1 }

</bundles_post_ra>
